<compile_context>
chip_gen: v7x
topology: tpu7x:2x2x1
jax: 0.10.0
libtpu: 0.0.40
codegen_flags: <defaults>
</compile_context>

<pallas_src>
import functools

import jax
import jax.numpy as jnp
from jax.experimental import pallas as pl
from jax.experimental.pallas import tpu as pltpu

EPS = 1e-8
F32 = jnp.float32
BF16 = jnp.bfloat16


# ------------------------------ in-kernel helpers ------------------------------

def _gln(y, gamma, beta):
    """Global LayerNorm over all (frame, channel) elements of one batch item.

    Single-pass statistics (E[x^2] - E[x]^2), clamped at 0 so fp error cannot
    produce a negative variance (tiny numeric drift vs. the two-pass form).
    """
    mean = jnp.mean(y)
    mean_sq = jnp.mean(y * y)
    var = jnp.maximum(mean_sq - mean * mean, 0.0)
    return gamma * (y - mean) * jax.lax.rsqrt(var + EPS) + beta


def _shift_frames(h, off, K, H):
    """tap[k, :] = h[k + off, :] if 0 <= k + off < K else 0   (static off).

    Value-level static slice + zero-concat: no VMEM pad scratch, no scratch-memory
    round trip; lowers to register-level sublane shifts.
    """
    if off == 0:
        return h
    z = jnp.zeros((abs(off), H), F32)
    if off > 0:
        return jnp.concatenate([h[off:, :], z], axis=0)
    return jnp.concatenate([z, h[:K + off, :]], axis=0)


# ------------------------------- Pallas kernels --------------------------------

def _encoder_kernel(x_ref, dvec_ref, wt_ref, wb_ref, g_ref, b_ref, bn_ref,
                    mw_ref, y_ref, *, K):
    # x_ref: (1, K+1, hop) waveform chunks; frame k = concat(chunk k, chunk k+1),
    # so the stride-hop conv is a split matmul (no gather, no [K, L] frame tensor).
    a = x_ref[0]                                               # [K+1, hop]
    mw = (jnp.dot(a[:K, :], wt_ref[...], preferred_element_type=F32) +
          jnp.dot(a[1:K + 1, :], wb_ref[...], preferred_element_type=F32))
    mw = jnp.maximum(mw, 0.0)                                  # ReLU encoder output
    mw_ref[0] = mw                                             # mixture_w [K, N]

    y = mw + dvec_ref[0]                                       # + speaker d-vector
    mean = jnp.mean(y, axis=-1, keepdims=True)                 # cLN over channels
    var = jnp.mean((y - mean) ** 2, axis=-1, keepdims=True)
    y = g_ref[...] * (y - mean) * jax.lax.rsqrt(var + EPS) + b_ref[...]
    # bottleneck 1x1 conv N -> B
    y_ref[0] = jnp.dot(y, bn_ref[...], preferred_element_type=F32)


def _tcn_fused_kernel(y_ref, w1_ref, g1_ref, b1_ref, dw_ref, g2_ref, b2_ref,
                      wp_ref, a1_ref, a2_ref, o_ref, *, K, H, P, X):
    # Grid = (batch m [parallel], repeat r [arbitrary]).  The residual stream lives
    # in the revisited output block o_ref for the whole TCN; per-repeat weights for
    # the X blocks (static dilations 1, 2, 4, ...) stream through VMEM per step.
    r = pl.program_id(1)

    @pl.when(r == 0)
    def _():
        o_ref[...] = y_ref[...]                                # seed residual stream

    y = o_ref[0]                                               # [K, B] f32
    for x in range(X):                                         # unrolled: static dil
        # 1x1 conv B -> H (bf16 MXU operands, f32 accumulate)
        h = jnp.dot(y.astype(BF16), w1_ref[x], preferred_element_type=F32)
        a1 = a1_ref[r, x]                                      # PReLU alpha (SMEM)
        h = jnp.where(h >= 0, h, a1 * h)
        h = _gln(h, g1_ref[x], b1_ref[x])

        # dilated depthwise conv, 'same' padding, taps as shifted adds (no scratch)
        dil = 2 ** x
        pad = (P - 1) * dil // 2
        dw = dw_ref[x]                                         # [P, H] f32
        acc = jnp.zeros((K, H), F32)
        for p in range(P):
            tap = _shift_frames(h, p * dil - pad, K, H)
            acc = acc + tap * dw[p, :]

        a2 = a2_ref[r, x]
        h2 = jnp.where(acc >= 0, acc, a2 * acc)
        h2 = _gln(h2, g2_ref[x], b2_ref[x])
        # pointwise 1x1 conv H -> B (bf16 MXU) + residual (f32)
        y = jnp.dot(h2.astype(BF16), wp_ref[x], preferred_element_type=F32) + y

    o_ref[0] = y


def _mask_decoder_kernel(y_ref, mix_ref, maskw_ref, dtop_ref, dbot_ref, o_ref,
                         *, K, hop):
    # per (batch m, speaker c): mask conv + relu + mask*mixture + basis matmul +
    # overlap-and-add.  Output is emitted transposed [hop, K+1] (frames on the lane
    # axis -> lane-dense) and stored with ONE full-block store.
    y = y_ref[0]                                               # [K, B] f32
    mix = mix_ref[0]                                           # [K, N] f32 (same per c)
    score = jnp.dot(y.astype(BF16), maskw_ref[0], preferred_element_type=F32)
    sw = (mix * jnp.maximum(score, 0.0)).astype(BF16)          # masked weights [K, N]

    dn = (((1,), (1,)), ((), ()))                              # contract both on N
    top_t = jax.lax.dot_general(dtop_ref[...], sw, dn,
                                preferred_element_type=F32)    # [hop, K]
    bot_t = jax.lax.dot_general(dbot_ref[...], sw, dn,
                                preferred_element_type=F32)    # [hop, K]

    # overlap-and-add with hop == L//2 folded into the [hop, K+1] layout
    z = jnp.zeros((hop, 1), F32)
    o_ref[0, 0] = (jnp.concatenate([top_t, z], axis=1) +
                   jnp.concatenate([z, bot_t], axis=1))


# ----------------------------- pallas_call wrappers -----------------------------

def encoder_bottleneck(mixture, dvec, enc_w, ln_g, ln_b, bn_w, K, hop):
    M = mixture.shape[0]
    _, N = enc_w.shape
    B = bn_w.shape[1]
    rows = K + 1
    x = mixture[:, :rows * hop].reshape(M, rows, hop)          # free metadata reshape
    dvec3 = dvec[:, None, :]                                   # [M, 1, N]
    w_top, w_bot = enc_w[:hop], enc_w[hop:]
    kern = functools.partial(_encoder_kernel, K=K)
    return pl.pallas_call(
        kern,
        out_shape=(jax.ShapeDtypeStruct((M, K, N), F32),
                   jax.ShapeDtypeStruct((M, K, B), F32)),
        grid=(M,),
        in_specs=[
            pl.BlockSpec((1, rows, hop), lambda m: (m, 0, 0)),
            pl.BlockSpec((1, 1, N), lambda m: (m, 0, 0)),
            pl.BlockSpec((hop, N), lambda m: (0, 0)),
            pl.BlockSpec((hop, N), lambda m: (0, 0)),
            pl.BlockSpec((1, N), lambda m: (0, 0)),
            pl.BlockSpec((1, N), lambda m: (0, 0)),
            pl.BlockSpec((N, B), lambda m: (0, 0)),
        ],
        out_specs=(pl.BlockSpec((1, K, N), lambda m: (m, 0, 0)),
                   pl.BlockSpec((1, K, B), lambda m: (m, 0, 0))),
        compiler_params=pltpu.CompilerParams(dimension_semantics=("parallel",)),
    )(x, dvec3, w_top, w_bot, ln_g, ln_b, bn_w)


def tcn_fused(y, p, *, P, X, R, K):
    M, _, B = y.shape
    H = p["tcn_w1"].shape[-1]
    smem = pl.BlockSpec(memory_space=pltpu.MemorySpace.SMEM)
    kern = functools.partial(_tcn_fused_kernel, K=K, H=H, P=P, X=X)
    return pl.pallas_call(
        kern,
        out_shape=jax.ShapeDtypeStruct((M, K, B), F32),
        grid=(M, R),
        in_specs=[
            pl.BlockSpec((1, K, B), lambda m, r: (m, 0, 0)),   # fetched once per m
            pl.BlockSpec((X, B, H), lambda m, r: (r, 0, 0)),   # w1 of repeat r
            pl.BlockSpec((X, 1, H), lambda m, r: (r, 0, 0)),   # gLN1 gamma
            pl.BlockSpec((X, 1, H), lambda m, r: (r, 0, 0)),   # gLN1 beta
            pl.BlockSpec((X, P, H), lambda m, r: (r, 0, 0)),   # depthwise taps
            pl.BlockSpec((X, 1, H), lambda m, r: (r, 0, 0)),   # gLN2 gamma
            pl.BlockSpec((X, 1, H), lambda m, r: (r, 0, 0)),   # gLN2 beta
            pl.BlockSpec((X, H, B), lambda m, r: (r, 0, 0)),   # pointwise wp
            smem,                                              # PReLU alpha1 [R, X]
            smem,                                              # PReLU alpha2 [R, X]
        ],
        out_specs=pl.BlockSpec((1, K, B), lambda m, r: (m, 0, 0)),  # resident over r
        compiler_params=pltpu.CompilerParams(
            dimension_semantics=("parallel", "arbitrary")),
    )(y, p["tcn_w1"], p["tcn_g1"], p["tcn_b1"], p["tcn_dw"],
      p["tcn_g2"], p["tcn_b2"], p["tcn_wp"], p["tcn_a1"], p["tcn_a2"])


def mask_decoder(y, mixture_w, mask_w, dec_w, C, hop):
    M, K, B = y.shape
    N = mixture_w.shape[-1]
    dec_top, dec_bot = dec_w[:hop], dec_w[hop:]                # [hop, N] each (bf16)
    kern = functools.partial(_mask_decoder_kernel, K=K, hop=hop)
    out = pl.pallas_call(
        kern,
        out_shape=jax.ShapeDtypeStruct((M, C, hop, K + 1), F32),
        grid=(M, C),
        in_specs=[
            pl.BlockSpec((1, K, B), lambda m, c: (m, 0, 0)),
            pl.BlockSpec((1, K, N), lambda m, c: (m, 0, 0)),   # same block for every c
            pl.BlockSpec((1, B, N), lambda m, c: (c, 0, 0)),   # speaker-c mask filters
            pl.BlockSpec((hop, N), lambda m, c: (0, 0)),
            pl.BlockSpec((hop, N), lambda m, c: (0, 0)),
        ],
        out_specs=pl.BlockSpec((1, 1, hop, K + 1), lambda m, c: (m, c, 0, 0)),
        compiler_params=pltpu.CompilerParams(
            dimension_semantics=("parallel", "parallel")),
    )(y, mixture_w, mask_w, dec_top, dec_bot)
    # restore time-major layout and flatten to the overlap-added signal (cheap XLA op)
    return jnp.swapaxes(out, -1, -2).reshape(M, C, (K + 1) * hop)


# -------------------------------- parameter init --------------------------------

def _xavier(key, shape, fan_in, fan_out, dtype=F32):
    std = (2.0 / (fan_in + fan_out)) ** 0.5
    return (std * jax.random.normal(key, shape, F32)).astype(dtype)


def init_params(key, N, L, B, H, P, X, R, C):
    NB = R * X
    keys = iter(jax.random.split(key, 4 + 3 * NB))
    p = {}
    # Encoder Conv1d(1, N, L): torch weight [N, 1, L] -> ours [L, N]
    p["enc_w"] = _xavier(next(keys), (L, N), L, N * L)
    # initial cLN over N
    p["ln_gamma"] = jnp.ones((1, N), F32)
    p["ln_beta"] = jnp.zeros((1, N), F32)
    # bottleneck 1x1 conv N -> B
    p["bn_w"] = _xavier(next(keys), (N, B), N, B)
    # TemporalBlocks, stacked along a leading [R*X] block axis
    w1, dw, wp = [], [], []
    for _ in range(NB):
        w1.append(_xavier(next(keys), (B, H), B, H))           # 1x1 conv B->H
        dw.append(_xavier(next(keys), (P, H), P, H * P))       # depthwise taps
        wp.append(_xavier(next(keys), (H, B), H, B))           # pointwise H->B
    p["tcn_w1"] = jnp.stack(w1).astype(BF16)                   # [NB, B, H]
    p["tcn_dw"] = jnp.stack(dw)                                # [NB, P, H] f32 (VPU)
    p["tcn_wp"] = jnp.stack(wp).astype(BF16)                   # [NB, H, B]
    p["tcn_g1"] = jnp.ones((NB, 1, H), F32)
    p["tcn_b1"] = jnp.zeros((NB, 1, H), F32)
    p["tcn_g2"] = jnp.ones((NB, 1, H), F32)
    p["tcn_b2"] = jnp.zeros((NB, 1, H), F32)
    p["tcn_a1"] = jnp.full((R, X), 0.25, F32)                  # PReLU (scalar per op)
    p["tcn_a2"] = jnp.full((R, X), 0.25, F32)
    # mask 1x1 conv B -> C*N, stored per speaker as [C, B, N]
    p["mask_w"] = _xavier(next(keys), (C, B, N), B, C * N, dtype=BF16)
    # decoder Linear(N, L), kept in the torch [L, N] layout (rows = samples in frame)
    p["dec_w"] = _xavier(next(keys), (L, N), N, L, dtype=BF16)
    return p


# --------------------------------- forward pass ---------------------------------

def conv_tasnet_forward(mixture, dvec, params, *, N, L, B, H, P, X, R, C):
    M, T = mixture.shape
    hop = L // 2
    K = (T - L) // hop + 1

    # Encoder conv + ReLU + d-vector add + cLN + bottleneck 1x1 (one fused kernel)
    mixture_w, y = encoder_bottleneck(
        mixture, dvec, params["enc_w"], params["ln_gamma"], params["ln_beta"],
        params["bn_w"], K, hop)

    # Whole TemporalConvNet in ONE pallas_call; activation stays resident in VMEM
    y = tcn_fused(y, params, P=P, X=X, R=R, K=K)

    # Mask conv + ReLU mask + mask*mixture + decoder matmul + overlap-add (fused)
    est_source = mask_decoder(y, mixture_w, params["mask_w"], params["dec_w"], C, hop)
    T_conv = est_source.shape[-1]
    est_source = jnp.pad(est_source, ((0, 0), (0, 0), (0, T - T_conv)))
    return est_source                                           # [M, C, T]


# -------------------------------------- main -------------------------------------

if __name__ == "__main__":
    # small hyper-parameters consistent with the module
    N, L, B, H, P, X, R, C = 16, 8, 16, 32, 3, 2, 2, 2
    M, T = 2, 68                                               # -> K = 16 frames

    key = jax.random.PRNGKey(0)
    k_param, k_mix, k_dvec = jax.random.split(key, 3)

    params = init_params(k_param, N, L, B, H, P, X, R, C)
    mixture = jax.random.normal(k_mix, (M, T), F32)
    dvec = jax.random.normal(k_dvec, (M, N), F32)

    fwd = jax.jit(functools.partial(conv_tasnet_forward,
                                    N=N, L=L, B=B, H=H, P=P, X=X, R=R, C=C))
    est_source = fwd(mixture, dvec, params)
    est_source = jax.block_until_ready(est_source)
    assert est_source.shape == (M, C, T)
    print("KERNEL_OK")
</pallas_src>

<mosaic_0001>
module attributes {stable_mosaic.version = 11 : i64} {
  func.func @_encoder_kernel(%arg0: i32, %arg1: memref<1x17x4xf32, #tpu.memory_space<vmem>>, %arg2: memref<1x1x16xf32, #tpu.memory_space<vmem>>, %arg3: memref<4x16xf32, #tpu.memory_space<vmem>>, %arg4: memref<4x16xf32, #tpu.memory_space<vmem>>, %arg5: memref<1x16xf32, #tpu.memory_space<vmem>>, %arg6: memref<1x16xf32, #tpu.memory_space<vmem>>, %arg7: memref<16x16xf32, #tpu.memory_space<vmem>>, %arg8: memref<1x16x16xf32, #tpu.memory_space<vmem>>, %arg9: memref<1x16x16xf32, #tpu.memory_space<vmem>>) attributes {dimension_semantics = [#tpu.dimension_semantics<parallel>], iteration_bounds = array<i64: 2>, scalar_prefetch = 0 : i64, scratch_operands = 0 : i64, tpu.core_type = #tpu.core_type<tc>, window_params = [{transform_indices = @transform_0, window_bounds = array<i64: 1, 17, 4>}, {transform_indices = @transform_1, window_bounds = array<i64: 1, 1, 16>}, {pipeline_mode = #tpu.pipeline_mode<synchronous>, transform_indices = @transform_2, window_bounds = array<i64: 4, 16>}, {pipeline_mode = #tpu.pipeline_mode<synchronous>, transform_indices = @transform_3, window_bounds = array<i64: 4, 16>}, {pipeline_mode = #tpu.pipeline_mode<synchronous>, transform_indices = @transform_4, window_bounds = array<i64: 1, 16>}, {pipeline_mode = #tpu.pipeline_mode<synchronous>, transform_indices = @transform_5, window_bounds = array<i64: 1, 16>}, {pipeline_mode = #tpu.pipeline_mode<synchronous>, transform_indices = @transform_6, window_bounds = array<i64: 16, 16>}, {transform_indices = @transform_7, window_bounds = array<i64: 1, 16, 16>}, {transform_indices = @transform_8, window_bounds = array<i64: 1, 16, 16>}]} {
    %c0 = arith.constant 0 : index
    %c0_0 = arith.constant 0 : index
    %c0_1 = arith.constant 0 : index
    %0 = vector.load %arg1[%c0, %c0_0, %c0_1] : memref<1x17x4xf32, #tpu.memory_space<vmem>>, vector<1x17x4xf32>
    %1 = vector.shape_cast %0 : vector<1x17x4xf32> to vector<17x4xf32>
    %2 = vector.extract_strided_slice %1 {offsets = [0, 0], sizes = [16, 4], strides = [1, 1]} : vector<17x4xf32> to vector<16x4xf32>
    %c0_2 = arith.constant 0 : index
    %c0_3 = arith.constant 0 : index
    %3 = vector.load %arg3[%c0_2, %c0_3] : memref<4x16xf32, #tpu.memory_space<vmem>>, vector<4x16xf32>
    %cst = arith.constant dense<0.000000e+00> : vector<16x16xf32>
    %4 = tpu.matmul %2, %3, %cst {dimension_numbers = #tpu.dot_dimension_numbers<[1], [0], [0], [1], [0, 0, 1, 1], [], []>} : vector<16x4xf32>, vector<4x16xf32>, vector<16x16xf32> -> vector<16x16xf32>
    %5 = vector.extract_strided_slice %1 {offsets = [1, 0], sizes = [16, 4], strides = [1, 1]} : vector<17x4xf32> to vector<16x4xf32>
    %c0_4 = arith.constant 0 : index
    %c0_5 = arith.constant 0 : index
    %6 = vector.load %arg4[%c0_4, %c0_5] : memref<4x16xf32, #tpu.memory_space<vmem>>, vector<4x16xf32>
    %cst_6 = arith.constant dense<0.000000e+00> : vector<16x16xf32>
    %7 = tpu.matmul %5, %6, %cst_6 {dimension_numbers = #tpu.dot_dimension_numbers<[1], [0], [0], [1], [0, 0, 1, 1], [], []>} : vector<16x4xf32>, vector<4x16xf32>, vector<16x16xf32> -> vector<16x16xf32>
    %8 = arith.addf %4, %7 : vector<16x16xf32>
    %cst_7 = arith.constant 0.000000e+00 : f32
    %9 = vector.broadcast %cst_7 : f32 to vector<16x16xf32>
    %10 = arith.maximumf %8, %9 : vector<16x16xf32>
    %c0_8 = arith.constant 0 : index
    %c0_9 = arith.constant 0 : index
    %c0_10 = arith.constant 0 : index
    %11 = vector.load %arg8[%c0_8, %c0_9, %c0_10] : memref<1x16x16xf32, #tpu.memory_space<vmem>>, vector<1x16x16xf32>
    %12 = vector.shape_cast %11 : vector<1x16x16xf32> to vector<16x16xf32>
    %13 = vector.shape_cast %10 : vector<16x16xf32> to vector<1x16x16xf32>
    tpu.vector_store %arg8[%c0_8, %c0_9, %c0_10], %13 {strides = array<i32>} : memref<1x16x16xf32, #tpu.memory_space<vmem>>, vector<1x16x16xf32>,
    %c0_11 = arith.constant 0 : index
    %c0_12 = arith.constant 0 : index
    %c0_13 = arith.constant 0 : index
    %14 = vector.load %arg2[%c0_11, %c0_12, %c0_13] : memref<1x1x16xf32, #tpu.memory_space<vmem>>, vector<1x1x16xf32>
    %15 = vector.shape_cast %14 : vector<1x1x16xf32> to vector<1x16xf32>
    %16 = vector.broadcast %15 : vector<1x16xf32> to vector<16x16xf32>
    %17 = arith.addf %10, %16 : vector<16x16xf32>
    %cst_14 = arith.constant dense<0.000000e+00> : vector<16xf32>
    %18 = vector.multi_reduction <add>, %17, %cst_14 [1] : vector<16x16xf32> to vector<16xf32>
    %19 = vector.shape_cast %18 : vector<16xf32> to vector<16x1xf32>
    %cst_15 = arith.constant 1.600000e+01 : f32
    %20 = vector.broadcast %cst_15 : f32 to vector<16x1xf32>
    %21 = arith.divf %19, %20 : vector<16x1xf32>
    %22 = vector.broadcast %21 : vector<16x1xf32> to vector<16x16xf32>
    %23 = arith.subf %17, %22 : vector<16x16xf32>
    %24 = arith.mulf %23, %23 : vector<16x16xf32>
    %cst_16 = arith.constant dense<0.000000e+00> : vector<16xf32>
    %25 = vector.multi_reduction <add>, %24, %cst_16 [1] : vector<16x16xf32> to vector<16xf32>
    %26 = vector.shape_cast %25 : vector<16xf32> to vector<16x1xf32>
    %cst_17 = arith.constant 1.600000e+01 : f32
    %27 = vector.broadcast %cst_17 : f32 to vector<16x1xf32>
    %28 = arith.divf %26, %27 : vector<16x1xf32>
    %c0_18 = arith.constant 0 : index
    %c0_19 = arith.constant 0 : index
    %29 = vector.load %arg5[%c0_18, %c0_19] : memref<1x16xf32, #tpu.memory_space<vmem>>, vector<1x16xf32>
    %30 = vector.broadcast %21 : vector<16x1xf32> to vector<16x16xf32>
    %31 = arith.subf %17, %30 : vector<16x16xf32>
    %32 = vector.broadcast %29 : vector<1x16xf32> to vector<16x16xf32>
    %33 = arith.mulf %32, %31 : vector<16x16xf32>
    %cst_20 = arith.constant 9.99999993E-9 : f32
    %34 = vector.broadcast %cst_20 : f32 to vector<16x1xf32>
    %35 = arith.addf %28, %34 : vector<16x1xf32>
    %36 = math.rsqrt %35 : vector<16x1xf32>
    %37 = vector.broadcast %36 : vector<16x1xf32> to vector<16x16xf32>
    %38 = arith.mulf %33, %37 : vector<16x16xf32>
    %c0_21 = arith.constant 0 : index
    %c0_22 = arith.constant 0 : index
    %39 = vector.load %arg6[%c0_21, %c0_22] : memref<1x16xf32, #tpu.memory_space<vmem>>, vector<1x16xf32>
    %40 = vector.broadcast %39 : vector<1x16xf32> to vector<16x16xf32>
    %41 = arith.addf %38, %40 : vector<16x16xf32>
    %c0_23 = arith.constant 0 : index
    %c0_24 = arith.constant 0 : index
    %42 = vector.load %arg7[%c0_23, %c0_24] : memref<16x16xf32, #tpu.memory_space<vmem>>, vector<16x16xf32>
    %cst_25 = arith.constant dense<0.000000e+00> : vector<16x16xf32>
    %43 = tpu.matmul %41, %42, %cst_25 {dimension_numbers = #tpu.dot_dimension_numbers<[1], [0], [0], [1], [0, 0, 1, 1], [], []>} : vector<16x16xf32>, vector<16x16xf32>, vector<16x16xf32> -> vector<16x16xf32>
    %c0_26 = arith.constant 0 : index
    %c0_27 = arith.constant 0 : index
    %c0_28 = arith.constant 0 : index
    %44 = vector.load %arg9[%c0_26, %c0_27, %c0_28] : memref<1x16x16xf32, #tpu.memory_space<vmem>>, vector<1x16x16xf32>
    %45 = vector.shape_cast %44 : vector<1x16x16xf32> to vector<16x16xf32>
    %46 = vector.shape_cast %43 : vector<16x16xf32> to vector<1x16x16xf32>
    tpu.vector_store %arg9[%c0_26, %c0_27, %c0_28], %46 {strides = array<i32>} : memref<1x16x16xf32, #tpu.memory_space<vmem>>, vector<1x16x16xf32>,
    return
  }
  func.func @transform_0(%arg0: i32) -> (i32, i32, i32) {
    %c0_i32 = arith.constant 0 : i32
    %c0_i32_0 = arith.constant 0 : i32
    %c0_i32_1 = arith.constant 0 : i32
    return %arg0, %c0_i32, %c0_i32_0 : i32, i32, i32
  }
  func.func @transform_1(%arg0: i32) -> (i32, i32, i32) {
    %c0_i32 = arith.constant 0 : i32
    %c0_i32_0 = arith.constant 0 : i32
    %c0_i32_1 = arith.constant 0 : i32
    return %arg0, %c0_i32, %c0_i32_0 : i32, i32, i32
  }
  func.func @transform_2(%arg0: i32) -> (i32, i32) {
    %c0_i32 = arith.constant 0 : i32
    %c0_i32_0 = arith.constant 0 : i32
    %c0_i32_1 = arith.constant 0 : i32
    return %c0_i32, %c0_i32_0 : i32, i32
  }
  func.func @transform_3(%arg0: i32) -> (i32, i32) {
    %c0_i32 = arith.constant 0 : i32
    %c0_i32_0 = arith.constant 0 : i32
    %c0_i32_1 = arith.constant 0 : i32
    return %c0_i32, %c0_i32_0 : i32, i32
  }
  func.func @transform_4(%arg0: i32) -> (i32, i32) {
    %c0_i32 = arith.constant 0 : i32
    %c0_i32_0 = arith.constant 0 : i32
    %c0_i32_1 = arith.constant 0 : i32
    return %c0_i32, %c0_i32_0 : i32, i32
  }
  func.func @transform_5(%arg0: i32) -> (i32, i32) {
    %c0_i32 = arith.constant 0 : i32
    %c0_i32_0 = arith.constant 0 : i32
    %c0_i32_1 = arith.constant 0 : i32
    return %c0_i32, %c0_i32_0 : i32, i32
  }
  func.func @transform_6(%arg0: i32) -> (i32, i32) {
    %c0_i32 = arith.constant 0 : i32
    %c0_i32_0 = arith.constant 0 : i32
    %c0_i32_1 = arith.constant 0 : i32
    return %c0_i32, %c0_i32_0 : i32, i32
  }
  func.func @transform_7(%arg0: i32) -> (i32, i32, i32) {
    %c0_i32 = arith.constant 0 : i32
    %c0_i32_0 = arith.constant 0 : i32
    %c0_i32_1 = arith.constant 0 : i32
    return %arg0, %c0_i32, %c0_i32_0 : i32, i32, i32
  }
  func.func @transform_8(%arg0: i32) -> (i32, i32, i32) {
    %c0_i32 = arith.constant 0 : i32
    %c0_i32_0 = arith.constant 0 : i32
    %c0_i32_1 = arith.constant 0 : i32
    return %arg0, %c0_i32, %c0_i32_0 : i32, i32, i32
  }
}

module attributes {stable_mosaic.version = 11 : i64} {
  func.func @_mask_decoder_kernel(%arg0: i32, %arg1: i32, %arg2: memref<1x16x16xf32, #tpu.memory_space<vmem>>, %arg3: memref<1x16x16xf32, #tpu.memory_space<vmem>>, %arg4: memref<1x16x16xbf16, #tpu.memory_space<vmem>>, %arg5: memref<4x16xbf16, #tpu.memory_space<vmem>>, %arg6: memref<4x16xbf16, #tpu.memory_space<vmem>>, %arg7: memref<1x1x4x17xf32, #tpu.memory_space<vmem>>) attributes {dimension_semantics = [#tpu.dimension_semantics<parallel>, #tpu.dimension_semantics<parallel>], iteration_bounds = array<i64: 2, 2>, scalar_prefetch = 0 : i64, scratch_operands = 0 : i64, tpu.core_type = #tpu.core_type<tc>, window_params = [{transform_indices = @transform_0, window_bounds = array<i64: 1, 16, 16>}, {transform_indices = @transform_1, window_bounds = array<i64: 1, 16, 16>}, {transform_indices = @transform_2, window_bounds = array<i64: 1, 16, 16>}, {pipeline_mode = #tpu.pipeline_mode<synchronous>, transform_indices = @transform_3, window_bounds = array<i64: 4, 16>}, {pipeline_mode = #tpu.pipeline_mode<synchronous>, transform_indices = @transform_4, window_bounds = array<i64: 4, 16>}, {transform_indices = @transform_5, window_bounds = array<i64: 1, 1, 4, 17>}]} {
    %c0 = arith.constant 0 : index
    %c0_0 = arith.constant 0 : index
    %c0_1 = arith.constant 0 : index
    %0 = vector.load %arg2[%c0, %c0_0, %c0_1] : memref<1x16x16xf32, #tpu.memory_space<vmem>>, vector<1x16x16xf32>
    %1 = vector.shape_cast %0 : vector<1x16x16xf32> to vector<16x16xf32>
    %c0_2 = arith.constant 0 : index
    %c0_3 = arith.constant 0 : index
    %c0_4 = arith.constant 0 : index
    %2 = vector.load %arg3[%c0_2, %c0_3, %c0_4] : memref<1x16x16xf32, #tpu.memory_space<vmem>>, vector<1x16x16xf32>
    %3 = vector.shape_cast %2 : vector<1x16x16xf32> to vector<16x16xf32>
    %4 = arith.truncf %1 : vector<16x16xf32> to vector<16x16xbf16>
    %c0_5 = arith.constant 0 : index
    %c0_6 = arith.constant 0 : index
    %c0_7 = arith.constant 0 : index
    %5 = vector.load %arg4[%c0_5, %c0_6, %c0_7] : memref<1x16x16xbf16, #tpu.memory_space<vmem>>, vector<1x16x16xbf16>
    %6 = vector.shape_cast %5 : vector<1x16x16xbf16> to vector<16x16xbf16>
    %cst = arith.constant dense<0.000000e+00> : vector<16x16xf32>
    %7 = tpu.matmul %4, %6, %cst {dimension_numbers = #tpu.dot_dimension_numbers<[1], [0], [0], [1], [0, 0, 1, 1], [], []>} : vector<16x16xbf16>, vector<16x16xbf16>, vector<16x16xf32> -> vector<16x16xf32>
    %cst_8 = arith.constant 0.000000e+00 : f32
    %8 = vector.broadcast %cst_8 : f32 to vector<16x16xf32>
    %9 = arith.maximumf %7, %8 : vector<16x16xf32>
    %10 = arith.mulf %3, %9 : vector<16x16xf32>
    %11 = arith.truncf %10 : vector<16x16xf32> to vector<16x16xbf16>
    %c0_9 = arith.constant 0 : index
    %c0_10 = arith.constant 0 : index
    %12 = vector.load %arg5[%c0_9, %c0_10] : memref<4x16xbf16, #tpu.memory_space<vmem>>, vector<4x16xbf16>
    %cst_11 = arith.constant dense<0.000000e+00> : vector<4x16xf32>
    %13 = tpu.matmul %12, %11, %cst_11 {dimension_numbers = #tpu.dot_dimension_numbers<[1], [1], [0], [0], [0, 0, 1, 0], [], []>} : vector<4x16xbf16>, vector<16x16xbf16>, vector<4x16xf32> -> vector<4x16xf32>
    %c0_12 = arith.constant 0 : index
    %c0_13 = arith.constant 0 : index
    %14 = vector.load %arg6[%c0_12, %c0_13] : memref<4x16xbf16, #tpu.memory_space<vmem>>, vector<4x16xbf16>
    %cst_14 = arith.constant dense<0.000000e+00> : vector<4x16xf32>
    %15 = tpu.matmul %14, %11, %cst_14 {dimension_numbers = #tpu.dot_dimension_numbers<[1], [1], [0], [0], [0, 0, 1, 0], [], []>} : vector<4x16xbf16>, vector<16x16xbf16>, vector<4x16xf32> -> vector<4x16xf32>
    %cst_15 = arith.constant 0.000000e+00 : f32
    %16 = vector.broadcast %cst_15 : f32 to vector<4x1xf32>
    %17 = tpu.concatenate %13, %16 in 1 : vector<4x16xf32>, vector<4x1xf32> -> vector<4x17xf32>
    %18 = tpu.concatenate %16, %15 in 1 : vector<4x1xf32>, vector<4x16xf32> -> vector<4x17xf32>
    %19 = arith.addf %17, %18 : vector<4x17xf32>
    %c0_16 = arith.constant 0 : index
    %c0_17 = arith.constant 0 : index
    %c0_18 = arith.constant 0 : index
    %c0_19 = arith.constant 0 : index
    %20 = vector.load %arg7[%c0_16, %c0_17, %c0_18, %c0_19] : memref<1x1x4x17xf32, #tpu.memory_space<vmem>>, vector<1x1x4x17xf32>
    %21 = vector.shape_cast %20 : vector<1x1x4x17xf32> to vector<4x17xf32>
    %22 = vector.shape_cast %19 : vector<4x17xf32> to vector<1x1x4x17xf32>
    tpu.vector_store %arg7[%c0_16, %c0_17, %c0_18, %c0_19], %22 {strides = array<i32>} : memref<1x1x4x17xf32, #tpu.memory_space<vmem>>, vector<1x1x4x17xf32>,
    return
  }
  func.func @transform_0(%arg0: i32, %arg1: i32) -> (i32, i32, i32) {
    %c0_i32 = arith.constant 0 : i32
    %c0_i32_0 = arith.constant 0 : i32
    %c0_i32_1 = arith.constant 0 : i32
    return %arg0, %c0_i32, %c0_i32_0 : i32, i32, i32
  }
  func.func @transform_1(%arg0: i32, %arg1: i32) -> (i32, i32, i32) {
    %c0_i32 = arith.constant 0 : i32
    %c0_i32_0 = arith.constant 0 : i32
    %c0_i32_1 = arith.constant 0 : i32
    return %arg0, %c0_i32, %c0_i32_0 : i32, i32, i32
  }
  func.func @transform_2(%arg0: i32, %arg1: i32) -> (i32, i32, i32) {
    %c0_i32 = arith.constant 0 : i32
    %c0_i32_0 = arith.constant 0 : i32
    %c0_i32_1 = arith.constant 0 : i32
    return %arg1, %c0_i32, %c0_i32_0 : i32, i32, i32
  }
  func.func @transform_3(%arg0: i32, %arg1: i32) -> (i32, i32) {
    %c0_i32 = arith.constant 0 : i32
    %c0_i32_0 = arith.constant 0 : i32
    %c0_i32_1 = arith.constant 0 : i32
    return %c0_i32, %c0_i32_0 : i32, i32
  }
  func.func @transform_4(%arg0: i32, %arg1: i32) -> (i32, i32) {
    %c0_i32 = arith.constant 0 : i32
    %c0_i32_0 = arith.constant 0 : i32
    %c0_i32_1 = arith.constant 0 : i32
    return %c0_i32, %c0_i32_0 : i32, i32
  }
  func.func @transform_5(%arg0: i32, %arg1: i32) -> (i32, i32, i32, i32) {
    %c0_i32 = arith.constant 0 : i32
    %c0_i32_0 = arith.constant 0 : i32
    %c0_i32_1 = arith.constant 0 : i32
    return %arg0, %arg1, %c0_i32, %c0_i32_0 : i32, i32, i32, i32
  }
}

module attributes {stable_mosaic.version = 11 : i64} {
  func.func @_tcn_fused_kernel(%arg0: i32, %arg1: i32, %arg2: memref<1x16x16xf32, #tpu.memory_space<vmem>>, %arg3: memref<2x16x32xbf16, #tpu.memory_space<vmem>>, %arg4: memref<2x1x32xf32, #tpu.memory_space<vmem>>, %arg5: memref<2x1x32xf32, #tpu.memory_space<vmem>>, %arg6: memref<2x3x32xf32, #tpu.memory_space<vmem>>, %arg7: memref<2x1x32xf32, #tpu.memory_space<vmem>>, %arg8: memref<2x1x32xf32, #tpu.memory_space<vmem>>, %arg9: memref<2x32x16xbf16, #tpu.memory_space<vmem>>, %arg10: memref<2x2xf32, #tpu.memory_space<smem>>, %arg11: memref<2x2xf32, #tpu.memory_space<smem>>, %arg12: memref<1x16x16xf32, #tpu.memory_space<vmem>>) attributes {dimension_semantics = [#tpu.dimension_semantics<parallel>, #tpu.dimension_semantics<arbitrary>], iteration_bounds = array<i64: 2, 2>, scalar_prefetch = 0 : i64, scratch_operands = 0 : i64, tpu.core_type = #tpu.core_type<tc>, window_params = [{transform_indices = @transform_0, window_bounds = array<i64: 1, 16, 16>}, {transform_indices = @transform_1, window_bounds = array<i64: 2, 16, 32>}, {transform_indices = @transform_2, window_bounds = array<i64: 2, 1, 32>}, {transform_indices = @transform_3, window_bounds = array<i64: 2, 1, 32>}, {transform_indices = @transform_4, window_bounds = array<i64: 2, 3, 32>}, {transform_indices = @transform_5, window_bounds = array<i64: 2, 1, 32>}, {transform_indices = @transform_6, window_bounds = array<i64: 2, 1, 32>}, {transform_indices = @transform_7, window_bounds = array<i64: 2, 32, 16>}, {transform_indices = @transform_8, window_bounds = array<i64: 2, 2>}, {transform_indices = @transform_9, window_bounds = array<i64: 2, 2>}, {transform_indices = @transform_10, window_bounds = array<i64: 1, 16, 16>}]} {
    %c0_i32 = arith.constant 0 : i32
    %0 = arith.cmpi eq, %arg1, %c0_i32 : i32
    %1 = arith.extui %0 : i1 to i32
    %c0_i32_0 = arith.constant 0 : i32
    %2 = arith.cmpi ne, %1, %c0_i32_0 : i32
    scf.if %2 {
      %c0_88 = arith.constant 0 : index
      %c0_89 = arith.constant 0 : index
      %c0_90 = arith.constant 0 : index
      %220 = vector.load %arg2[%c0_88, %c0_89, %c0_90] : memref<1x16x16xf32, #tpu.memory_space<vmem>>, vector<1x16x16xf32>
      %c0_91 = arith.constant 0 : index
      %c0_92 = arith.constant 0 : index
      %c0_93 = arith.constant 0 : index
      %221 = vector.load %arg12[%c0_91, %c0_92, %c0_93] : memref<1x16x16xf32, #tpu.memory_space<vmem>>, vector<1x16x16xf32>
      tpu.vector_store %arg12[%c0_91, %c0_92, %c0_93], %220 {strides = array<i32>} : memref<1x16x16xf32, #tpu.memory_space<vmem>>, vector<1x16x16xf32>,
    } else {
    }
    %c0 = arith.constant 0 : index
    %c0_1 = arith.constant 0 : index
    %c0_2 = arith.constant 0 : index
    %3 = vector.load %arg12[%c0, %c0_1, %c0_2] : memref<1x16x16xf32, #tpu.memory_space<vmem>>, vector<1x16x16xf32>
    %4 = vector.shape_cast %3 : vector<1x16x16xf32> to vector<16x16xf32>
    %5 = arith.truncf %4 : vector<16x16xf32> to vector<16x16xbf16>
    %c0_3 = arith.constant 0 : index
    %c0_4 = arith.constant 0 : index
    %c0_5 = arith.constant 0 : index
    %6 = vector.load %arg3[%c0_3, %c0_4, %c0_5] : memref<2x16x32xbf16, #tpu.memory_space<vmem>>, vector<1x16x32xbf16>
    %7 = vector.shape_cast %6 : vector<1x16x32xbf16> to vector<16x32xbf16>
    %cst = arith.constant dense<0.000000e+00> : vector<16x32xf32>
    %8 = tpu.matmul %5, %7, %cst {dimension_numbers = #tpu.dot_dimension_numbers<[1], [0], [0], [1], [0, 0, 1, 1], [], []>} : vector<16x16xbf16>, vector<16x32xbf16>, vector<16x32xf32> -> vector<16x32xf32>
    %9 = arith.index_cast %arg1 : i32 to index
    %c0_6 = arith.constant 0 : index
    %10 = memref.load %arg10[%9, %c0_6] : memref<2x2xf32, #tpu.memory_space<smem>>
    %cst_7 = arith.constant 0.000000e+00 : f32
    %11 = vector.broadcast %cst_7 : f32 to vector<16x32xf32>
    %12 = arith.cmpf oge, %8, %11 : vector<16x32xf32>
    %13 = vector.broadcast %10 : f32 to vector<16x32xf32>
    %14 = arith.mulf %13, %8 : vector<16x32xf32>
    %15 = arith.select %12, %8, %14 : vector<16x32xi1>, vector<16x32xf32>
    %c0_8 = arith.constant 0 : index
    %c0_9 = arith.constant 0 : index
    %c0_10 = arith.constant 0 : index
    %16 = vector.load %arg4[%c0_8, %c0_9, %c0_10] : memref<2x1x32xf32, #tpu.memory_space<vmem>>, vector<1x1x32xf32>
    %17 = vector.shape_cast %16 : vector<1x1x32xf32> to vector<1x32xf32>
    %c0_11 = arith.constant 0 : index
    %c0_12 = arith.constant 0 : index
    %c0_13 = arith.constant 0 : index
    %18 = vector.load %arg5[%c0_11, %c0_12, %c0_13] : memref<2x1x32xf32, #tpu.memory_space<vmem>>, vector<1x1x32xf32>
    %19 = vector.shape_cast %18 : vector<1x1x32xf32> to vector<1x32xf32>
    %20 = vector.shape_cast %15 : vector<16x32xf32> to vector<1x16x32xf32>
    %cst_14 = arith.constant dense<0.000000e+00> : vector<1xf32>
    %21 = vector.multi_reduction <add>, %20, %cst_14 [1, 2] : vector<1x16x32xf32> to vector<1xf32>
    %22 = vector.shape_cast %21 : vector<1xf32> to vector<1x1x1xf32>
    %23 = vector.extract %22[0, 0, 0] : f32 from vector<1x1x1xf32>
    %cst_15 = arith.constant 5.120000e+02 : f32
    %24 = arith.divf %23, %cst_15 : f32
    %25 = arith.mulf %15, %15 : vector<16x32xf32>
    %26 = vector.shape_cast %25 : vector<16x32xf32> to vector<1x16x32xf32>
    %cst_16 = arith.constant dense<0.000000e+00> : vector<1xf32>
    %27 = vector.multi_reduction <add>, %26, %cst_16 [1, 2] : vector<1x16x32xf32> to vector<1xf32>
    %28 = vector.shape_cast %27 : vector<1xf32> to vector<1x1x1xf32>
    %29 = vector.extract %28[0, 0, 0] : f32 from vector<1x1x1xf32>
    %cst_17 = arith.constant 5.120000e+02 : f32
    %30 = arith.divf %29, %cst_17 : f32
    %31 = arith.mulf %24, %24 : f32
    %32 = arith.subf %30, %31 : f32
    %cst_18 = arith.constant 0.000000e+00 : f32
    %33 = arith.maximumf %32, %cst_18 : f32
    %34 = vector.broadcast %24 : f32 to vector<16x32xf32>
    %35 = arith.subf %15, %34 : vector<16x32xf32>
    %36 = vector.broadcast %17 : vector<1x32xf32> to vector<16x32xf32>
    %37 = arith.mulf %36, %35 : vector<16x32xf32>
    %cst_19 = arith.constant 9.99999993E-9 : f32
    %38 = arith.addf %33, %cst_19 : f32
    %39 = math.rsqrt %38 : f32
    %40 = vector.broadcast %39 : f32 to vector<16x32xf32>
    %41 = arith.mulf %37, %40 : vector<16x32xf32>
    %42 = vector.broadcast %19 : vector<1x32xf32> to vector<16x32xf32>
    %43 = arith.addf %41, %42 : vector<16x32xf32>
    %c0_20 = arith.constant 0 : index
    %c0_21 = arith.constant 0 : index
    %c0_22 = arith.constant 0 : index
    %44 = vector.load %arg6[%c0_20, %c0_21, %c0_22] : memref<2x3x32xf32, #tpu.memory_space<vmem>>, vector<1x3x32xf32>
    %45 = vector.shape_cast %44 : vector<1x3x32xf32> to vector<3x32xf32>
    %cst_23 = arith.constant 0.000000e+00 : f32
    %46 = vector.broadcast %cst_23 : f32 to vector<16x32xf32>
    %cst_24 = arith.constant 0.000000e+00 : f32
    %47 = vector.broadcast %cst_24 : f32 to vector<1x32xf32>
    %48 = vector.extract_strided_slice %43 {offsets = [0, 0], sizes = [15, 32], strides = [1, 1]} : vector<16x32xf32> to vector<15x32xf32>
    %49 = tpu.concatenate %47, %48 in 0 : vector<1x32xf32>, vector<15x32xf32> -> vector<16x32xf32>
    %50 = vector.extract_strided_slice %45 {offsets = [0, 0], sizes = [1, 32], strides = [1, 1]} : vector<3x32xf32> to vector<1x32xf32>
    %51 = vector.shape_cast %50 : vector<1x32xf32> to vector<32xf32>
    %52 = vector.shape_cast %51 : vector<32xf32> to vector<1x32xf32>
    %53 = vector.broadcast %52 : vector<1x32xf32> to vector<16x32xf32>
    %54 = arith.mulf %49, %53 : vector<16x32xf32>
    %55 = arith.addf %46, %54 : vector<16x32xf32>
    %56 = vector.extract_strided_slice %45 {offsets = [1, 0], sizes = [1, 32], strides = [1, 1]} : vector<3x32xf32> to vector<1x32xf32>
    %57 = vector.shape_cast %56 : vector<1x32xf32> to vector<32xf32>
    %58 = vector.shape_cast %57 : vector<32xf32> to vector<1x32xf32>
    %59 = vector.broadcast %58 : vector<1x32xf32> to vector<16x32xf32>
    %60 = arith.mulf %43, %59 : vector<16x32xf32>
    %61 = arith.addf %55, %60 : vector<16x32xf32>
    %cst_25 = arith.constant 0.000000e+00 : f32
    %62 = vector.broadcast %cst_25 : f32 to vector<1x32xf32>
    %63 = vector.extract_strided_slice %43 {offsets = [1, 0], sizes = [15, 32], strides = [1, 1]} : vector<16x32xf32> to vector<15x32xf32>
    %64 = tpu.concatenate %63, %62 in 0 : vector<15x32xf32>, vector<1x32xf32> -> vector<16x32xf32>
    %65 = vector.extract_strided_slice %45 {offsets = [2, 0], sizes = [1, 32], strides = [1, 1]} : vector<3x32xf32> to vector<1x32xf32>
    %66 = vector.shape_cast %65 : vector<1x32xf32> to vector<32xf32>
    %67 = vector.shape_cast %66 : vector<32xf32> to vector<1x32xf32>
    %68 = vector.broadcast %67 : vector<1x32xf32> to vector<16x32xf32>
    %69 = arith.mulf %64, %68 : vector<16x32xf32>
    %70 = arith.addf %61, %69 : vector<16x32xf32>
    %71 = arith.index_cast %arg1 : i32 to index
    %c0_26 = arith.constant 0 : index
    %72 = memref.load %arg11[%71, %c0_26] : memref<2x2xf32, #tpu.memory_space<smem>>
    %cst_27 = arith.constant 0.000000e+00 : f32
    %73 = vector.broadcast %cst_27 : f32 to vector<16x32xf32>
    %74 = arith.cmpf oge, %70, %73 : vector<16x32xf32>
    %75 = vector.broadcast %72 : f32 to vector<16x32xf32>
    %76 = arith.mulf %75, %70 : vector<16x32xf32>
    %77 = arith.select %74, %70, %76 : vector<16x32xi1>, vector<16x32xf32>
    %c0_28 = arith.constant 0 : index
    %c0_29 = arith.constant 0 : index
    %c0_30 = arith.constant 0 : index
    %78 = vector.load %arg7[%c0_28, %c0_29, %c0_30] : memref<2x1x32xf32, #tpu.memory_space<vmem>>, vector<1x1x32xf32>
    %79 = vector.shape_cast %78 : vector<1x1x32xf32> to vector<1x32xf32>
    %c0_31 = arith.constant 0 : index
    %c0_32 = arith.constant 0 : index
    %c0_33 = arith.constant 0 : index
    %80 = vector.load %arg8[%c0_31, %c0_32, %c0_33] : memref<2x1x32xf32, #tpu.memory_space<vmem>>, vector<1x1x32xf32>
    %81 = vector.shape_cast %80 : vector<1x1x32xf32> to vector<1x32xf32>
    %82 = vector.shape_cast %77 : vector<16x32xf32> to vector<1x16x32xf32>
    %cst_34 = arith.constant dense<0.000000e+00> : vector<1xf32>
    %83 = vector.multi_reduction <add>, %82, %cst_34 [1, 2] : vector<1x16x32xf32> to vector<1xf32>
    %84 = vector.shape_cast %83 : vector<1xf32> to vector<1x1x1xf32>
    %85 = vector.extract %84[0, 0, 0] : f32 from vector<1x1x1xf32>
    %cst_35 = arith.constant 5.120000e+02 : f32
    %86 = arith.divf %85, %cst_35 : f32
    %87 = arith.mulf %77, %77 : vector<16x32xf32>
    %88 = vector.shape_cast %87 : vector<16x32xf32> to vector<1x16x32xf32>
    %cst_36 = arith.constant dense<0.000000e+00> : vector<1xf32>
    %89 = vector.multi_reduction <add>, %88, %cst_36 [1, 2] : vector<1x16x32xf32> to vector<1xf32>
    %90 = vector.shape_cast %89 : vector<1xf32> to vector<1x1x1xf32>
    %91 = vector.extract %90[0, 0, 0] : f32 from vector<1x1x1xf32>
    %cst_37 = arith.constant 5.120000e+02 : f32
    %92 = arith.divf %91, %cst_37 : f32
    %93 = arith.mulf %86, %86 : f32
    %94 = arith.subf %92, %93 : f32
    %cst_38 = arith.constant 0.000000e+00 : f32
    %95 = arith.maximumf %94, %cst_38 : f32
    %96 = vector.broadcast %86 : f32 to vector<16x32xf32>
    %97 = arith.subf %77, %96 : vector<16x32xf32>
    %98 = vector.broadcast %79 : vector<1x32xf32> to vector<16x32xf32>
    %99 = arith.mulf %98, %97 : vector<16x32xf32>
    %cst_39 = arith.constant 9.99999993E-9 : f32
    %100 = arith.addf %95, %cst_39 : f32
    %101 = math.rsqrt %100 : f32
    %102 = vector.broadcast %101 : f32 to vector<16x32xf32>
    %103 = arith.mulf %99, %102 : vector<16x32xf32>
    %104 = vector.broadcast %81 : vector<1x32xf32> to vector<16x32xf32>
    %105 = arith.addf %103, %104 : vector<16x32xf32>
    %106 = arith.truncf %105 : vector<16x32xf32> to vector<16x32xbf16>
    %c0_40 = arith.constant 0 : index
    %c0_41 = arith.constant 0 : index
    %c0_42 = arith.constant 0 : index
    %107 = vector.load %arg9[%c0_40, %c0_41, %c0_42] : memref<2x32x16xbf16, #tpu.memory_space<vmem>>, vector<1x32x16xbf16>
    %108 = vector.shape_cast %107 : vector<1x32x16xbf16> to vector<32x16xbf16>
    %cst_43 = arith.constant dense<0.000000e+00> : vector<16x16xf32>
    %109 = tpu.matmul %106, %108, %cst_43 {dimension_numbers = #tpu.dot_dimension_numbers<[1], [0], [0], [1], [0, 0, 1, 1], [], []>} : vector<16x32xbf16>, vector<32x16xbf16>, vector<16x16xf32> -> vector<16x16xf32>
    %110 = arith.addf %109, %4 : vector<16x16xf32>
    %111 = arith.truncf %110 : vector<16x16xf32> to vector<16x16xbf16>
    %c1 = arith.constant 1 : index
    %c0_44 = arith.constant 0 : index
    %c0_45 = arith.constant 0 : index
    %112 = vector.load %arg3[%c1, %c0_44, %c0_45] : memref<2x16x32xbf16, #tpu.memory_space<vmem>>, vector<1x16x32xbf16>
    %113 = vector.shape_cast %112 : vector<1x16x32xbf16> to vector<16x32xbf16>
    %cst_46 = arith.constant dense<0.000000e+00> : vector<16x32xf32>
    %114 = tpu.matmul %111, %113, %cst_46 {dimension_numbers = #tpu.dot_dimension_numbers<[1], [0], [0], [1], [0, 0, 1, 1], [], []>} : vector<16x16xbf16>, vector<16x32xbf16>, vector<16x32xf32> -> vector<16x32xf32>
    %115 = arith.index_cast %arg1 : i32 to index
    %c1_47 = arith.constant 1 : index
    %116 = memref.load %arg10[%115, %c1_47] : memref<2x2xf32, #tpu.memory_space<smem>>
    %cst_48 = arith.constant 0.000000e+00 : f32
    %117 = vector.broadcast %cst_48 : f32 to vector<16x32xf32>
    %118 = arith.cmpf oge, %114, %117 : vector<16x32xf32>
    %119 = vector.broadcast %116 : f32 to vector<16x32xf32>
    %120 = arith.mulf %119, %114 : vector<16x32xf32>
    %121 = arith.select %118, %114, %120 : vector<16x32xi1>, vector<16x32xf32>
    %c1_49 = arith.constant 1 : index
    %c0_50 = arith.constant 0 : index
    %c0_51 = arith.constant 0 : index
    %122 = vector.load %arg4[%c1_49, %c0_50, %c0_51] : memref<2x1x32xf32, #tpu.memory_space<vmem>>, vector<1x1x32xf32>
    %123 = vector.shape_cast %122 : vector<1x1x32xf32> to vector<1x32xf32>
    %c1_52 = arith.constant 1 : index
    %c0_53 = arith.constant 0 : index
    %c0_54 = arith.constant 0 : index
    %124 = vector.load %arg5[%c1_52, %c0_53, %c0_54] : memref<2x1x32xf32, #tpu.memory_space<vmem>>, vector<1x1x32xf32>
    %125 = vector.shape_cast %124 : vector<1x1x32xf32> to vector<1x32xf32>
    %126 = vector.shape_cast %121 : vector<16x32xf32> to vector<1x16x32xf32>
    %cst_55 = arith.constant dense<0.000000e+00> : vector<1xf32>
    %127 = vector.multi_reduction <add>, %126, %cst_55 [1, 2] : vector<1x16x32xf32> to vector<1xf32>
    %128 = vector.shape_cast %127 : vector<1xf32> to vector<1x1x1xf32>
    %129 = vector.extract %128[0, 0, 0] : f32 from vector<1x1x1xf32>
    %cst_56 = arith.constant 5.120000e+02 : f32
    %130 = arith.divf %129, %cst_56 : f32
    %131 = arith.mulf %121, %121 : vector<16x32xf32>
    %132 = vector.shape_cast %131 : vector<16x32xf32> to vector<1x16x32xf32>
    %cst_57 = arith.constant dense<0.000000e+00> : vector<1xf32>
    %133 = vector.multi_reduction <add>, %132, %cst_57 [1, 2] : vector<1x16x32xf32> to vector<1xf32>
    %134 = vector.shape_cast %133 : vector<1xf32> to vector<1x1x1xf32>
    %135 = vector.extract %134[0, 0, 0] : f32 from vector<1x1x1xf32>
    %cst_58 = arith.constant 5.120000e+02 : f32
    %136 = arith.divf %135, %cst_58 : f32
    %137 = arith.mulf %130, %130 : f32
    %138 = arith.subf %136, %137 : f32
    %cst_59 = arith.constant 0.000000e+00 : f32
    %139 = arith.maximumf %138, %cst_59 : f32
    %140 = vector.broadcast %130 : f32 to vector<16x32xf32>
    %141 = arith.subf %121, %140 : vector<16x32xf32>
    %142 = vector.broadcast %123 : vector<1x32xf32> to vector<16x32xf32>
    %143 = arith.mulf %142, %141 : vector<16x32xf32>
    %cst_60 = arith.constant 9.99999993E-9 : f32
    %144 = arith.addf %139, %cst_60 : f32
    %145 = math.rsqrt %144 : f32
    %146 = vector.broadcast %145 : f32 to vector<16x32xf32>
    %147 = arith.mulf %143, %146 : vector<16x32xf32>
    %148 = vector.broadcast %125 : vector<1x32xf32> to vector<16x32xf32>
    %149 = arith.addf %147, %148 : vector<16x32xf32>
    %c1_61 = arith.constant 1 : index
    %c0_62 = arith.constant 0 : index
    %c0_63 = arith.constant 0 : index
    %150 = vector.load %arg6[%c1_61, %c0_62, %c0_63] : memref<2x3x32xf32, #tpu.memory_space<vmem>>, vector<1x3x32xf32>
    %151 = vector.shape_cast %150 : vector<1x3x32xf32> to vector<3x32xf32>
    %cst_64 = arith.constant 0.000000e+00 : f32
    %152 = vector.broadcast %cst_64 : f32 to vector<16x32xf32>
    %cst_65 = arith.constant 0.000000e+00 : f32
    %153 = vector.broadcast %cst_65 : f32 to vector<2x32xf32>
    %154 = vector.extract_strided_slice %149 {offsets = [0, 0], sizes = [14, 32], strides = [1, 1]} : vector<16x32xf32> to vector<14x32xf32>
    %155 = tpu.concatenate %153, %154 in 0 : vector<2x32xf32>, vector<14x32xf32> -> vector<16x32xf32>
    %156 = vector.extract_strided_slice %151 {offsets = [0, 0], sizes = [1, 32], strides = [1, 1]} : vector<3x32xf32> to vector<1x32xf32>
    %157 = vector.shape_cast %156 : vector<1x32xf32> to vector<32xf32>
    %158 = vector.shape_cast %157 : vector<32xf32> to vector<1x32xf32>
    %159 = vector.broadcast %158 : vector<1x32xf32> to vector<16x32xf32>
    %160 = arith.mulf %155, %159 : vector<16x32xf32>
    %161 = arith.addf %152, %160 : vector<16x32xf32>
    %162 = vector.extract_strided_slice %151 {offsets = [1, 0], sizes = [1, 32], strides = [1, 1]} : vector<3x32xf32> to vector<1x32xf32>
    %163 = vector.shape_cast %162 : vector<1x32xf32> to vector<32xf32>
    %164 = vector.shape_cast %163 : vector<32xf32> to vector<1x32xf32>
    %165 = vector.broadcast %164 : vector<1x32xf32> to vector<16x32xf32>
    %166 = arith.mulf %149, %165 : vector<16x32xf32>
    %167 = arith.addf %161, %166 : vector<16x32xf32>
    %cst_66 = arith.constant 0.000000e+00 : f32
    %168 = vector.broadcast %cst_66 : f32 to vector<2x32xf32>
    %169 = vector.extract_strided_slice %149 {offsets = [2, 0], sizes = [14, 32], strides = [1, 1]} : vector<16x32xf32> to vector<14x32xf32>
    %170 = tpu.concatenate %169, %168 in 0 : vector<14x32xf32>, vector<2x32xf32> -> vector<16x32xf32>
    %171 = vector.extract_strided_slice %151 {offsets = [2, 0], sizes = [1, 32], strides = [1, 1]} : vector<3x32xf32> to vector<1x32xf32>
    %172 = vector.shape_cast %171 : vector<1x32xf32> to vector<32xf32>
    %173 = vector.shape_cast %172 : vector<32xf32> to vector<1x32xf32>
    %174 = vector.broadcast %173 : vector<1x32xf32> to vector<16x32xf32>
    %175 = arith.mulf %170, %174 : vector<16x32xf32>
    %176 = arith.addf %167, %175 : vector<16x32xf32>
    %177 = arith.index_cast %arg1 : i32 to index
    %c1_67 = arith.constant 1 : index
    %178 = memref.load %arg11[%177, %c1_67] : memref<2x2xf32, #tpu.memory_space<smem>>
    %cst_68 = arith.constant 0.000000e+00 : f32
    %179 = vector.broadcast %cst_68 : f32 to vector<16x32xf32>
    %180 = arith.cmpf oge, %176, %179 : vector<16x32xf32>
    %181 = vector.broadcast %178 : f32 to vector<16x32xf32>
    %182 = arith.mulf %181, %176 : vector<16x32xf32>
    %183 = arith.select %180, %176, %182 : vector<16x32xi1>, vector<16x32xf32>
    %c1_69 = arith.constant 1 : index
    %c0_70 = arith.constant 0 : index
    %c0_71 = arith.constant 0 : index
    %184 = vector.load %arg7[%c1_69, %c0_70, %c0_71] : memref<2x1x32xf32, #tpu.memory_space<vmem>>, vector<1x1x32xf32>
    %185 = vector.shape_cast %184 : vector<1x1x32xf32> to vector<1x32xf32>
    %c1_72 = arith.constant 1 : index
    %c0_73 = arith.constant 0 : index
    %c0_74 = arith.constant 0 : index
    %186 = vector.load %arg8[%c1_72, %c0_73, %c0_74] : memref<2x1x32xf32, #tpu.memory_space<vmem>>, vector<1x1x32xf32>
    %187 = vector.shape_cast %186 : vector<1x1x32xf32> to vector<1x32xf32>
    %188 = vector.shape_cast %183 : vector<16x32xf32> to vector<1x16x32xf32>
    %cst_75 = arith.constant dense<0.000000e+00> : vector<1xf32>
    %189 = vector.multi_reduction <add>, %188, %cst_75 [1, 2] : vector<1x16x32xf32> to vector<1xf32>
    %190 = vector.shape_cast %189 : vector<1xf32> to vector<1x1x1xf32>
    %191 = vector.extract %190[0, 0, 0] : f32 from vector<1x1x1xf32>
    %cst_76 = arith.constant 5.120000e+02 : f32
    %192 = arith.divf %191, %cst_76 : f32
    %193 = arith.mulf %183, %183 : vector<16x32xf32>
    %194 = vector.shape_cast %193 : vector<16x32xf32> to vector<1x16x32xf32>
    %cst_77 = arith.constant dense<0.000000e+00> : vector<1xf32>
    %195 = vector.multi_reduction <add>, %194, %cst_77 [1, 2] : vector<1x16x32xf32> to vector<1xf32>
    %196 = vector.shape_cast %195 : vector<1xf32> to vector<1x1x1xf32>
    %197 = vector.extract %196[0, 0, 0] : f32 from vector<1x1x1xf32>
    %cst_78 = arith.constant 5.120000e+02 : f32
    %198 = arith.divf %197, %cst_78 : f32
    %199 = arith.mulf %192, %192 : f32
    %200 = arith.subf %198, %199 : f32
    %cst_79 = arith.constant 0.000000e+00 : f32
    %201 = arith.maximumf %200, %cst_79 : f32
    %202 = vector.broadcast %192 : f32 to vector<16x32xf32>
    %203 = arith.subf %183, %202 : vector<16x32xf32>
    %204 = vector.broadcast %185 : vector<1x32xf32> to vector<16x32xf32>
    %205 = arith.mulf %204, %203 : vector<16x32xf32>
    %cst_80 = arith.constant 9.99999993E-9 : f32
    %206 = arith.addf %201, %cst_80 : f32
    %207 = math.rsqrt %206 : f32
    %208 = vector.broadcast %207 : f32 to vector<16x32xf32>
    %209 = arith.mulf %205, %208 : vector<16x32xf32>
    %210 = vector.broadcast %187 : vector<1x32xf32> to vector<16x32xf32>
    %211 = arith.addf %209, %210 : vector<16x32xf32>
    %212 = arith.truncf %211 : vector<16x32xf32> to vector<16x32xbf16>
    %c1_81 = arith.constant 1 : index
    %c0_82 = arith.constant 0 : index
    %c0_83 = arith.constant 0 : index
    %213 = vector.load %arg9[%c1_81, %c0_82, %c0_83] : memref<2x32x16xbf16, #tpu.memory_space<vmem>>, vector<1x32x16xbf16>
    %214 = vector.shape_cast %213 : vector<1x32x16xbf16> to vector<32x16xbf16>
    %cst_84 = arith.constant dense<0.000000e+00> : vector<16x16xf32>
    %215 = tpu.matmul %212, %214, %cst_84 {dimension_numbers = #tpu.dot_dimension_numbers<[1], [0], [0], [1], [0, 0, 1, 1], [], []>} : vector<16x32xbf16>, vector<32x16xbf16>, vector<16x16xf32> -> vector<16x16xf32>
    %216 = arith.addf %215, %110 : vector<16x16xf32>
    %c0_85 = arith.constant 0 : index
    %c0_86 = arith.constant 0 : index
    %c0_87 = arith.constant 0 : index
    %217 = vector.load %arg12[%c0_85, %c0_86, %c0_87] : memref<1x16x16xf32, #tpu.memory_space<vmem>>, vector<1x16x16xf32>
    %218 = vector.shape_cast %217 : vector<1x16x16xf32> to vector<16x16xf32>
    %219 = vector.shape_cast %216 : vector<16x16xf32> to vector<1x16x16xf32>
    tpu.vector_store %arg12[%c0_85, %c0_86, %c0_87], %219 {strides = array<i32>} : memref<1x16x16xf32, #tpu.memory_space<vmem>>, vector<1x16x16xf32>,
    return
  }
  func.func @transform_0(%arg0: i32, %arg1: i32) -> (i32, i32, i32) {
    %c0_i32 = arith.constant 0 : i32
    %c0_i32_0 = arith.constant 0 : i32
    %c0_i32_1 = arith.constant 0 : i32
    return %arg0, %c0_i32, %c0_i32_0 : i32, i32, i32
  }
  func.func @transform_1(%arg0: i32, %arg1: i32) -> (i32, i32, i32) {
    %c0_i32 = arith.constant 0 : i32
    %c0_i32_0 = arith.constant 0 : i32
    %c0_i32_1 = arith.constant 0 : i32
    return %arg1, %c0_i32, %c0_i32_0 : i32, i32, i32
  }
  func.func @transform_2(%arg0: i32, %arg1: i32) -> (i32, i32, i32) {
    %c0_i32 = arith.constant 0 : i32
    %c0_i32_0 = arith.constant 0 : i32
    %c0_i32_1 = arith.constant 0 : i32
    return %arg1, %c0_i32, %c0_i32_0 : i32, i32, i32
  }
  func.func @transform_3(%arg0: i32, %arg1: i32) -> (i32, i32, i32) {
    %c0_i32 = arith.constant 0 : i32
    %c0_i32_0 = arith.constant 0 : i32
    %c0_i32_1 = arith.constant 0 : i32
    return %arg1, %c0_i32, %c0_i32_0 : i32, i32, i32
  }
  func.func @transform_4(%arg0: i32, %arg1: i32) -> (i32, i32, i32) {
    %c0_i32 = arith.constant 0 : i32
    %c0_i32_0 = arith.constant 0 : i32
    %c0_i32_1 = arith.constant 0 : i32
    return %arg1, %c0_i32, %c0_i32_0 : i32, i32, i32
  }
  func.func @transform_5(%arg0: i32, %arg1: i32) -> (i32, i32, i32) {
    %c0_i32 = arith.constant 0 : i32
    %c0_i32_0 = arith.constant 0 : i32
    %c0_i32_1 = arith.constant 0 : i32
    return %arg1, %c0_i32, %c0_i32_0 : i32, i32, i32
  }
  func.func @transform_6(%arg0: i32, %arg1: i32) -> (i32, i32, i32) {
    %c0_i32 = arith.constant 0 : i32
    %c0_i32_0 = arith.constant 0 : i32
    %c0_i32_1 = arith.constant 0 : i32
    return %arg1, %c0_i32, %c0_i32_0 : i32, i32, i32
  }
  func.func @transform_7(%arg0: i32, %arg1: i32) -> (i32, i32, i32) {
    %c0_i32 = arith.constant 0 : i32
    %c0_i32_0 = arith.constant 0 : i32
    %c0_i32_1 = arith.constant 0 : i32
    return %arg1, %c0_i32, %c0_i32_0 : i32, i32, i32
  }
  func.func @transform_8(%arg0: i32, %arg1: i32) -> (i32, i32) {
    %c0_i32 = arith.constant 0 : i32
    %c0_i32_0 = arith.constant 0 : i32
    %c0_i32_1 = arith.constant 0 : i32
    return %c0_i32, %c0_i32_0 : i32, i32
  }
  func.func @transform_9(%arg0: i32, %arg1: i32) -> (i32, i32) {
    %c0_i32 = arith.constant 0 : i32
    %c0_i32_0 = arith.constant 0 : i32
    %c0_i32_1 = arith.constant 0 : i32
    return %c0_i32, %c0_i32_0 : i32, i32
  }
  func.func @transform_10(%arg0: i32, %arg1: i32) -> (i32, i32, i32) {
    %c0_i32 = arith.constant 0 : i32
    %c0_i32_0 = arith.constant 0 : i32
    %c0_i32_1 = arith.constant 0 : i32
    return %arg0, %c0_i32, %c0_i32_0 : i32, i32, i32
  }
}

</mosaic_0001>

<bundles_post_ra>
// kernel: conv_tasnet_forward.5
= control target key start
LH: loop header
LB: loop body
LE: loop exit
PB: predicated region body
PF: predicated region fallthrough
CT: control target
= control target key end

     0   :  { %s717_s18 = smov 0   ;;  %s719_s19 = smov 0   ;;  %s791_s0 = inlined_call_operand.vmem [shape: f32[2,16,16], index: 0, kind: input, shape index: {}]   ;;  %s792_s1 = inlined_call_operand.vmem [shape: f32[2,16,16], index: 1, kind: input, shape index: {}]   ;;  %s793_s2 = inlined_call_operand.vmem [shape: bf16[2,16,16], index: 2, kind: input, shape index: {}]   ;;  %s794_s3 = inlined_call_operand.vmem [shape: bf16[4,16], index: 3, kind: input, shape index: {}]   ;;  %s795_s4 = inlined_call_operand.vmem [shape: bf16[4,16], index: 4, kind: input, shape index: {}]   ;;  %s796_s5 = inlined_call_operand.vmem [shape: f32[2,2,4,17], index: 5, kind: output, shape index: {}]  }
   0x1   :  { %s721_s20 = smov 0   ;;  %s723_s21 = smov 0  }
   0x2   :  { %s725_s22 = smov 0  }
   0x3 LB: > { %s24_s23 = sadd.s32 1, %s674_s20  ;;  %s27_s24 = sadd.s32 1, %s678_s21  ;;  %s682_s22 = sphi %s725_s22, %s15_s22   ;;  %s678_s21 = sphi %s723_s21, %s800_s21   ;;  %s674_s20 = sphi %s721_s20, %s799_s20   ;;  %s670_s19 = sphi %s719_s19, %s798_s19   ;;  %s666_s18 = sphi %s717_s18, %s797_s18  }
   0x4   : > { %p25_p0 = scmp.ge.s32.totalorder %s24_s23, 2  ;;  %p558_p1 = scmp.ge.s32.totalorder %s682_s22, 1 }
   0x5   : > { %p221_p2 = scmp.lt.s32.totalorder %s682_s22, 5 }
   0x6   : > { %s802_s23 = smov (%p25_p0, %s24_s23), 0  ;;  %s804_s24 = smov (!%p25_p0, %s27_s24), %s678_s21 }
   0x7   : > { %p222_p3 = pnand %p558_p1, %p221_p2  ;;  %p29_p4 = scmp.ge.s32.totalorder %s804_s24, 2 }
   0x8   : > { %p262_p5 = scmp.lt.s32.totalorder (!%p222_p3), %s670_s19, 1  ;;  %p272_p6 = scmp.lt.s32.totalorder (!%p222_p3), %s666_s18, 1  ;;  %v684_v0 = vmov (!%p222_p3), 0.0   ;;  %vm685_vm0 = vmmov (!%p222_p3), 0   ;;  %vm299_vm1 = vcmask (!%p222_p3), 130048   ;;  %vm445_vm2 = vcmask (!%p222_p3), 7168  }
   0x9   : > { %s806_s24 = smov (%p29_p4, %s804_s24), 0  ;;  %225 = sbr.rel (%p222_p3) target bundleno = 583 (0x247), region = 40 }
   0xa   : > { %582 = vmatprep.subr.bf16.mxu0 (!%p222_p3), %v684_v0  ;;  %584 = vmatprep.mubr.msk.bf16.mxu0 (!%p222_p3), %vm685_vm0, %v684_v0  ;;  %v396_v17 = vld [vmem:[%s795_s4] sm:$0x3] (!%p222_p3)  ;;  %s686_s17 = smov (!%p222_p3), 1   ;;  %vm448_vm3 = vcmask (!%p222_p3), 134144  }
   0xb   : > { %588 = vmatprep.subr.bf16.mxu1 (!%p222_p3), %v684_v0  ;;  %590 = vmatprep.mubr.msk.bf16.mxu1 (!%p222_p3), %vm685_vm0, %v684_v0  ;;  %v349_v18 = vld [vmem:[%s794_s3] sm:$0x3] (!%p222_p3) }
  0x10   : > { %s808_s19 = smov (!%p262_p5, %s670_s19), 1  ;;  %s810_s18 = smov (!%p272_p6, %s666_s18), 1 }
  0x11   : > { %s565_s25 = sshll.u32 %s808_s19, 1  ;;  %s573_s26 = sshll.u32 %s808_s19, 4 }
  0x12   : > { %s575_s27 = sshll.u32 %s810_s18, 3  ;;  %s749_s28 = sadd.s32 %s565_s25, %s810_s18 }
  0x13   : > { %s276_s6 = scalar_lea.vmem %s793_s2, %s575_s27  ;;  %s266_s9 = scalar_lea.vmem %s791_s0, %s573_s26 }
  0x14   : > { %v643_v1 = vld [vmem:[%s276_s6] sm:$0xff]   ;;  %v287_v3 = vld [vmem:[%s266_s9 + $0x8] sm:$0xff]  ;;  %s271_s12 = scalar_lea.vmem %s792_s1, %s573_s26  ;;  %s566_s18 = sshll.u32 %s749_s28, 2 }
  0x15   : > { %v286_v2 = vld [vmem:[%s266_s9] sm:$0xff]  ;;  %583 = vmatpush3.bf16.msra.mxu0 %v643_v1  ;;  %v289_v9 = vld [vmem:[%s271_s12 + $0x8] sm:$0xff]  ;;  %s284_s26 = scalar_lea.vmem %s796_s5, %s566_s18 }
  0x16   : > { %v290_v4 = vpack.c.bf16 %v287_v3, %v286_v2  ;;  %594 = vmatprep.subr.bf16.mxu0 %v684_v0  ;;  %v288_v5 = vld [vmem:[%s271_s12] sm:$0xff] }
  0x18   : > { %585 = vmatmul.mubr.msk.bf16.vlgmr.msra.gmra.mrb[0].mxu0 %vm299_vm1, %v290_v4 }
  0x19   : > { %596 = vmatprep.mubr.msk.bf16.mxu0 %vm685_vm0, %v684_v0 }
  0xeb   : > { %v337_v6 = vpop.f32.mrb[0].mxu0 }
  0xec   : > { %v344_v7 = vmax.f32 %v337_v6, 0.0  ;;  %v586_v8 = vpop.f32.mrb[1].mxu0 }
  0xed   : > { %v340_v10 = vpop.f32.mrb[2].mxu0 }
  0xee   : > { %v346_v11 = vmul.f32 %v344_v7, %v288_v5  ;;  %v345_v12 = vmax.f32 %v340_v10, 0.0  ;;  %v587_v13 = vpop.f32.mrb[3].mxu0 }
  0xf0   : > { %v347_v14 = vmul.f32 %v345_v12, %v289_v9 }
  0xf2   : > { %v348_v15 = vpack.c.bf16 %v347_v14, %v346_v11 }
  0xf4   : > { %v354_v16 = vsel %vm299_vm1, %v348_v15, 0 }
  0xf5   : > { %589 = vmatpush3.bf16.xpose.msra.mxu1 %v354_v16  ;;  %595 = vmatpush3.bf16.xpose.msra.mxu0 %v354_v16 }
  0xfc   : > { %597 = vmatmul.mubr.msk.bf16.vlgmr.msra.gmra.mrb[4].mxu0 %vm299_vm1, %v396_v17  ;;  %591 = vmatmul.mubr.msk.bf16.vlgmr.msra.gmra.mrb[0].mxu1 %vm299_vm1, %v349_v18 }
 0x1cf   : > { %v434_v19 = vpop.f32.mrb[4].mxu0  ;;  %v390_v20 = vpop.f32.mrb[0].mxu1 }
 0x1d0   : > { %v598_v21 = vpop.f32.mrb[5].mxu0  ;;  %442 = vrot.lane.b32.xlu0 %v434_v19, %s686_s17  ;;  %v592_v22 = vpop.f32.mrb[1].mxu1  ;;  %v440_v27 = vsel %vm299_vm1, %v390_v20, 0.0 }
 0x1d1   : > { %v437_v23 = vpop.f32.mrb[6].mxu0  ;;  %v393_v24 = vpop.f32.mrb[2].mxu1 }
 0x1d2   : > { %v599_v25 = vpop.f32.mrb[7].mxu0  ;;  %v593_v26 = vpop.f32.mrb[3].mxu1 }
 0x242   : > { %v443_v28 = vpop.permute.xlu0 %442 }
 0x243   : > { %v446_v29 = vsel %vm445_vm2, 0.0, %v443_v28 }
 0x244   : > { %v447_v30 = vadd.f32 %v446_v29, %v440_v27 }
 0x246   : > { %449 = vst.msk [vmem:[%s284_s26] sm:$0xf] %vm448_vm3, %v447_v30 }
 0x247 PF: > { %s15_s22 = sadd.s32 1, %s682_s22   ;;  %s797_s18 = smov %s674_s20 }
 0x248   : > { %p12_p7 = scmp.ge.s32.totalorder %s15_s22, 6   ;;  %s798_s19 = smov %s678_s21 }
 0x249   : > { %s799_s20 = smov %s802_s23  ;;  %s800_s21 = smov %s806_s24 }
 0x24a   :  { %14 = sbr.rel (!%p12_p7) target bundleno = 3 (0x3), region = 76 }

// kernel: conv_tasnet_forward.3
= control target key start
LH: loop header
LB: loop body
LE: loop exit
PB: predicated region body
PF: predicated region fallthrough
CT: control target
= control target key end

     0   :  { %s878_s27 = smov 0   ;;  %s942_s0 = inlined_call_operand.vmem [shape: f32[2,17,4], index: 0, kind: input, shape index: {}]   ;;  %s943_s1 = inlined_call_operand.vmem [shape: f32[2,1,16], index: 1, kind: input, shape index: {}]   ;;  %s944_s2 = inlined_call_operand.vmem [shape: f32[4,16], index: 2, kind: input, shape index: {}]   ;;  %s945_s3 = inlined_call_operand.vmem [shape: f32[4,16], index: 3, kind: input, shape index: {}]   ;;  %s946_s4 = inlined_call_operand.vmem [shape: f32[1,16], index: 4, kind: input, shape index: {}]   ;;  %s947_s5 = inlined_call_operand.vmem [shape: f32[1,16], index: 5, kind: input, shape index: {}]   ;;  %s948_s6 = inlined_call_operand.vmem [shape: f32[16,16], index: 6, kind: input, shape index: {}]   ;;  %s949_s7 = inlined_call_operand.vmem [shape: f32[2,16,16], index: 7, kind: output, shape index: {0}]   ;;  %s950_s8 = inlined_call_operand.vmem [shape: f32[2,16,16], index: 8, kind: output, shape index: {1}]  }
   0x1 LB: > { %s754_s28 = sadd.s32 4294967295, %s831_s27   ;;  %p758_p0 = scmp.ge.s32.totalorder %s831_s27, 1  ;;  %s831_s27 = sphi %s878_s27, %s19_s27  }
   0x2   : > { %p273_p1 = scmp.lt.s32.totalorder %s831_s27, 3 }
   0x4   : > { %p274_p2 = pnand %p758_p0, %p273_p1 }
   0x5   : > { %v337_v0 = vld [vmem:[%s945_s3] sm:$0xf] (!%p274_p2)  ;;  %vm352_vm0 = vcmask (!%p274_p2), 1043456   ;;  %p315_p3 = scmp.lt.s32.totalorder (!%p274_p2), %s754_s28, 1  ;;  %vm341_vm1 = vcmask (!%p274_p2), 1046528   ;;  %vm347_vm2 = vcmask (!%p274_p2), 31744  }
   0x6   : > { %277 = sbr.rel (%p274_p2) target bundleno = 776 (0x308), region = 48  ;;  %789 = vmatprep.subr.msk.mxu0 (!%p274_p2), %vm352_vm0, %v337_v0  ;;  %v336_v1 = vld [vmem:[%s944_s2] sm:$0xf] (!%p274_p2)  ;;  %vm515_vm3 = vcmask (!%p274_p2), 130048   ;;  %v573_v30 = vld [vmem:[%s948_s6 + $0x8] sm:$0xff] (!%p274_p2) }
   0x7   : > { %790 = vmatpush3.msk.msra.mxu0 (!%p274_p2), %vm352_vm0, %v337_v0  ;;  %v572_v29 = vld [vmem:[%s948_s6] sm:$0xff] (!%p274_p2) }
   0x8   : > { %794 = vmatprep.subr.msk.mxu0 (!%p274_p2), %vm352_vm0, %v336_v1  ;;  %v806_v31 = vpack.c.bf16 (!%p274_p2), %v573_v30, %v572_v29  ;;  %v771_v38 = vld [vmem:[%s946_s4] ss:$0 sm:$0xff] (!%p274_p2) }
   0x9   : > { %v772_v41 = vld [vmem:[%s947_s5] ss:$0 sm:$0xff] (!%p274_p2) }
   0xa   : > { %807 = vmatprep.subr.bf16.mxu1 (!%p274_p2), %v806_v31 }
   0xb   : > { %809 = vmatpush3.bf16.msra.mxu1 (!%p274_p2), %v806_v31 }
   0xd   : > { %s952_s28 = smov (!%p315_p3, %s754_s28), 1 }
   0xe   : > { %s812_s11 = smul.u32 24, %s952_s28  ;;  %s777_s15 = sshll.u32 %s952_s28, 4 }
   0xf   : > { %s322_s18 = scalar_lea.vmem %s943_s1, %s952_s28  ;;  %s327_s21 = scalar_lea.vmem %s949_s7, %s777_s15 }
  0x10   : > { %s319_s14 = scalar_lea.vmem %s942_s0, %s812_s11  ;;  %v770_v13 = vld [vmem:[%s322_s18] ss:$0 sm:$0xff]  ;;  %s332_s12 = scalar_lea.vmem %s950_s8, %s777_s15 }
  0x11   : > { %v333_v2 = vld [vmem:[%s319_s14] sm:$0xff]  ;;  %v334_v3 = vld [vmem:[%s319_s14 + $0x8] sm:$0xff]  ;;  %v335_v4 = vld [vmem:[%s319_s14 + $0x10] sm:$0x1] }
  0x12   : > { %v342_v5 = vrot.slane %v333_v2, 1  ;;  %v343_v6 = vrot.slane %v334_v3, 1  ;;  %v345_v7 = vrot.slane %v335_v4, 1 }
  0x14   : > { %v344_v8 = vsel %vm341_vm1, %v342_v5, %v343_v6  ;;  %v346_v9 = vsel %vm341_vm1, %v343_v6, %v345_v7 }
  0x15   : > { %791 = vmatprep.mubr.msk.f32.mxu0 %vm347_vm2, %v344_v8 }
  0x16   : > { %792 = vmatmul.mubr.msk.f32.vlgmr.msra.gmra.mrb[0].mxu0 %vm347_vm2, %v346_v9 }
  0x17   : > { %795 = vmatpush3.msk.msra.mxu0 %vm352_vm0, %v336_v1  ;;  %796 = vmatprep.mubr.msk.f32.mxu0 %vm347_vm2, %v333_v2 }
  0x1e   : > { %797 = vmatmul.mubr.msk.f32.vlgmr.msra.gmra.mrb[0].mxu0 %vm347_vm2, %v334_v3 }
  0xf1   : > { %v798_v10 = vpop.f32.mrb[0].mxu0 }
  0xf2   : > { %v514_v11 = vmax.f32 %v798_v10, 0.0  ;;  %v504_v12 = vpop.f32.mrb[1].mxu0 }
  0xf3   : > { %v513_v14 = vmax.f32 %v504_v12, 0.0 }
  0xf4   : > { %517 = vst.msk [vmem:[%s327_s21 + $0x8] sm:$0xff] %vm515_vm3, %v514_v11  ;;  %v526_v17 = vadd.f32 %v770_v13, %v514_v11 }
  0xf5   : > { %516 = vst.msk [vmem:[%s327_s21] sm:$0xff] %vm515_vm3, %v513_v14  ;;  %v525_v15 = vadd.f32 %v770_v13, %v513_v14 }
  0xf6   : > { %v530_v18 = vsel %vm515_vm3, %v526_v17, 0.0 }
  0xf7   : > { %v527_v16 = vsel %vm515_vm3, %v525_v15, 0.0 }
  0xf8   : > { %528 = vadd.xlane.f32.xlu0 %v527_v16 }
  0xfc   : > { %531 = vadd.xlane.f32.xlu0 %v530_v18 }
 0x185   : > { %v529_v19 = vpop.xlane.xlu0 %528 }
 0x186   : > { %v534_v20 = vmul.f32 0.0625, %v529_v19 }
 0x188   : > { %v536_v21 = vsub.f32 %v525_v15, %v534_v20 }
 0x189   : > { %v532_v22 = vpop.xlane.xlu0 %531 }
 0x18a   : > { %v535_v23 = vmul.f32 0.0625, %v532_v22  ;;  %v538_v24 = vmul.f32 %v536_v21, %v536_v21  ;;  %v555_v39 = vmul.f32 %v771_v38, %v536_v21 }
 0x18c   : > { %v537_v25 = vsub.f32 %v526_v17, %v535_v23  ;;  %v540_v26 = vsel %vm515_vm3, %v538_v24, 0.0 }
 0x18d   : > { %541 = vadd.xlane.f32.xlu1 %v540_v26 }
 0x18e   : > { %v539_v27 = vmul.f32 %v537_v25, %v537_v25  ;;  %v556_v43 = vmul.f32 %v771_v38, %v537_v25 }
 0x190   : > { %v543_v28 = vsel %vm515_vm3, %v539_v27, 0.0 }
 0x191   : > { %544 = vadd.xlane.f32.xlu1 %v543_v28 }
 0x21a   : > { %v542_v32 = vpop.xlane.xlu1 %541 }
 0x21b   : > { %v546_v33 = vmul.f32 0.0625, %v542_v32 }
 0x21d   : > { %v557_v34 = vadd.f32 1e-08, %v546_v33 }
 0x21e   : > { %v545_v35 = vpop.xlane.xlu1 %544 }
 0x21f   : > { %821 = vrsqrt.f32 %v557_v34  ;;  %v547_v36 = vmul.f32 0.0625, %v545_v35 }
 0x221   : > { %v558_v37 = vadd.f32 1e-08, %v547_v36 }
 0x223   : > { %823 = vrsqrt.f32 %v558_v37 }
 0x229   : > { %v822_v40 = vpop.eup %821 }
 0x22a   : > { %v561_v42 = vmul.f32 %v822_v40, %v555_v39 }
 0x22c   : > { %v570_v44 = vadd.f32 %v772_v41, %v561_v42 }
 0x22d   : > { %v824_v45 = vpop.eup %823 }
 0x22e   : > { %v562_v46 = vmul.f32 %v824_v45, %v556_v43  ;;  %803 = vmatprep.mubr.msk.f32.mxu1 %vm515_vm3, %v570_v44 }
 0x230   : > { %v571_v47 = vadd.f32 %v772_v41, %v562_v46 }
 0x232   : > { %804 = vmatmul.mubr.msk.f32.vlgmr.msra.gmra.mrb[0].mxu1 %vm515_vm3, %v571_v47 }
 0x305   : > { %v805_v48 = vpop.f32.mrb[0].mxu1 }
 0x306   : > { %656 = vst.msk [vmem:[%s332_s12 + $0x8] sm:$0xff] %vm515_vm3, %v805_v48  ;;  %v646_v49 = vpop.f32.mrb[1].mxu1 }
 0x307   : > { %655 = vst.msk [vmem:[%s332_s12] sm:$0xff] %vm515_vm3, %v646_v49 }
 0x308 PF: > { %s19_s27 = sadd.s32 1, %s831_s27  }
 0x309   : > { %p16_p4 = scmp.ge.s32.totalorder %s19_s27, 4  }
 0x30b   :  { %18 = sbr.rel (!%p16_p4) target bundleno = 1 (0x1), region = 93 }

// kernel: conv_tasnet_forward.4
= control target key start
LH: loop header
LB: loop body
LE: loop exit
PB: predicated region body
PF: predicated region fallthrough
CT: control target
= control target key end

     0   :  { %s1907_s0 = inlined_call_operand.vmem [shape: f32[2,16,16], index: 0, kind: input, shape index: {}]   ;;  %s1908_s1 = inlined_call_operand.vmem [shape: bf16[4,16,32], index: 1, kind: input, shape index: {}]   ;;  %s1909_s2 = inlined_call_operand.vmem [shape: f32[4,1,32], index: 2, kind: input, shape index: {}]   ;;  %s1910_s3 = inlined_call_operand.vmem [shape: f32[4,1,32], index: 3, kind: input, shape index: {}]   ;;  %s1911_s4 = inlined_call_operand.vmem [shape: f32[4,3,32], index: 4, kind: input, shape index: {}]   ;;  %s1912_s5 = inlined_call_operand.vmem [shape: f32[4,1,32], index: 5, kind: input, shape index: {}]   ;;  %s1913_s6 = inlined_call_operand.vmem [shape: f32[4,1,32], index: 6, kind: input, shape index: {}]   ;;  %s1914_s7 = inlined_call_operand.vmem [shape: bf16[4,32,16], index: 7, kind: input, shape index: {}]   ;;  %s1915_s8 = inlined_call_operand.vmem [shape: f32[2,2], index: 8, kind: input, shape index: {}]   ;;  %s1916_s9 = inlined_call_operand.vmem [shape: f32[2,2], index: 9, kind: input, shape index: {}]   ;;  %s1917_s10 = inlined_call_operand.vmem [shape: f32[2,16,16], index: 10, kind: output, shape index: {}]  }
   0x1   :  { %1921 = sst [smem:[#allocation9_spill]] %s1907_s0 }
   0x2   :  { %1922 = sst [smem:[#allocation10_spill]] %s1908_s1 }
   0x3   :  { %1923 = sst [smem:[#allocation11_spill]] %s1909_s2 }
   0x4   :  { %1924 = sst [smem:[#allocation12_spill]] %s1910_s3 }
   0x5   :  { %1925 = sst [smem:[#allocation13_spill]] %s1915_s8 }
   0x6   :  { %1926 = sst [smem:[#allocation14_spill]] %s1916_s9 }
   0x7   :  { %15 = vsyncpa [#allocation3], 0 }
   0x8   :  { %16 = vsyncpa [#allocation5], 0  ;;  %s1667_s13 = smov 0   ;;  %s1669_s14 = smov 0  }
   0x9   :  { %s1671_s15 = smov 0   ;;  %s1673_s16 = smov 0  }
   0xa   :  { %s1675_s17 = smov 0  }
   0xb LB: > { %s1327_s18 = sadd.s32 4294967295, %s1605_s17   ;;  %s31_s19 = sadd.s32 1, %s1597_s15  ;;  %s1605_s17 = sphi %s1675_s17, %s22_s17   ;;  %s1601_s16 = sphi %s1673_s16, %s1943_s16   ;;  %s1597_s15 = sphi %s1671_s15, %s1942_s15   ;;  %s1593_s14 = sphi %s1669_s14, %s1941_s14   ;;  %s1589_s13 = sphi %s1667_s13, %s1940_s13  }
   0xc   : > { %p32_p0 = scmp.ge.s32.totalorder %s31_s19, 2  ;;  %s34_s20 = sadd.s32 1, %s1601_s16 }
   0xd   : > { %p1329_p1 = scmp.ge.s32.totalorder %s1605_s17, 1  ;;  %p315_p2 = scmp.lt.s32.totalorder %s1605_s17, 5 }
   0xe   : > { %s1945_s19 = smov (%p32_p0, %s31_s19), 0  ;;  %s1947_s20 = smov (!%p32_p0, %s34_s20), %s1601_s16 }
   0xf   : > { %p1700_p3 = pnand %p1329_p1, %p315_p2  ;;  %p36_p4 = scmp.ge.s32.totalorder %s1947_s20, 2 }
  0x10   : > { %p1704_p5 = scmp.eq.s32.totalorder %s1327_s18, 0  ;;  %s1929_s8 = sld [smem:[#allocation13_spill]] }
  0x11   : > { %s1927_s21 = scalar_select %p1700_p3, 1, 0 }
  0x12   : > { %s1928_s22 = scalar_select %p1704_p5, 1, 0 }
  0x13   : > { %p1459_p6 = pneg %p1700_p3  ;;  %s1949_s20 = smov (%p36_p4, %s1947_s20), 0 }
  0x14   : > { %1930 = sst [smem:[#allocation8_spill]] %s1949_s20  ;;  %s1932_s9 = sld [smem:[#allocation14_spill]] }
  0x15   : > { %p1717_p7 = pnand %p1704_p5, %p1459_p6 }
  0x16   : > { %s328_s25 = sshll.u32 %s1929_s8, 4  ;;  %s329_s25 = int_to_ptr.vmem [resolvable:$true] %s328_s25 }
  0x17   : > { %s1529_s30 = scalar_lea.vmem %s329_s25, 32  ;;  %p1531_p9 = pneg %p1717_p7 }
  0x18   : > { %p1530_p8 = scmp.ne.s32.totalorder %s329_s25, %s1529_s30  ;;  %p1537_p12 = scmp.lt.s32.totalorder %s329_s25, %s329_s25 }
  0x19   : > { %p1538_p13 = scmp.lt.s32.totalorder %s1529_s30, %s1529_s30 }
  0x1a   : > { %s339_s29 = sshll.u32 %s1932_s9, 4  ;;  %p1532_p10 = pnand %p1531_p9, %p1530_p8  ;;  %s340_s29 = int_to_ptr.vmem [resolvable:$true] %s339_s29 }
  0x1b   : > { %p1539_p0 = por %p1538_p13, %p1537_p12 }
  0x1c   : > { %p1533_p11 = pneg %p1532_p10 }
  0x1e   : > { %p1540_p1 = pnand %p1539_p0, %p1533_p11 }
  0x20   : > { %1543 = shalt.err (!%p1540_p1)
}
  0x21   : > { %s1607_s11 = smov [#allocation2]   ;;  %s1544_s12 = scalar_lea.vmem %s340_s29, 32 }
  0x22   : > { %1462 = dma.vmem_to_smem (!%p1717_p7), %s329_s25, 32, %s1607_s11, [#allocation3]  }
  0x23   : > { %p1545_p2 = scmp.ne.s32.totalorder %s340_s29, %s1544_s12  ;;  %p1552_p5 = scmp.lt.s32.totalorder %s340_s29, %s340_s29 }
  0x24   : > { %p1553_p3 = scmp.lt.s32.totalorder %s1544_s12, %s1544_s12 }
  0x25   : > { %p1547_p4 = pnand %p1545_p2, %p1531_p9 }
  0x26   : > { %p1554_p8 = por %p1553_p3, %p1552_p5 }
  0x27   : > { %p1548_p6 = pneg %p1547_p4 }
  0x29   : > { %p1555_p10 = pnand %p1554_p8, %p1548_p6 }
  0x2b   : > { %1558 = shalt.err (!%p1555_p10)
}
  0x2c   : > { %s1608_s18 = smov [#allocation4]   ;;  %p1933_p11 = scmp.ne.s32.totalorder %s1927_s21, 0 }
  0x2d   : > { %1465 = dma.vmem_to_smem (!%p1717_p7), %s340_s29, 32, %s1608_s18, [#allocation5]  }
  0x2e   : > { %421 = sbr.rel (%p1933_p11) target bundleno = 2116 (0x844), region = 60  ;;  %p1934_p12 = scmp.ne.s32.totalorder (!%p1933_p11), %s1928_s22, 0 }
  0x35   : > { %1580 = dma.done.wait (%p1934_p12), [#allocation3], 32  }
  0x36   : > { %1582 = vsyncadd (%p1934_p12), [#allocation3], 4294967264 }
  0x37   : > { %1584 = dma.done.wait (%p1934_p12), [#allocation5], 32  }
  0x38   : > { %1586 = vsyncadd (%p1934_p12), [#allocation5], 4294967264 }
  0x39   : > { %431 = sfence }
  0x3a   : > { %p497_p3 = scmp.lt.s32.totalorder %s1593_s14, 1  ;;  %s1338_s23 = sshll.u32 %s1589_s13, 1 }
  0x3b   : > { %p503_p5 = scmp.lt.s32.totalorder %s1338_s23, 3  ;;  %s1935_s0 = sld [smem:[#allocation9_spill]] }
  0x3c   : > { %s1951_s14 = smov (!%p497_p3, %s1593_s14), 1  ;;  %s1936_s1 = sld [smem:[#allocation10_spill]] }
  0x3d   : > { %s1953_s23 = smov (!%p503_p5, %s1338_s23), 3  ;;  %s1385_s21 = sshll.u32 %s1951_s14, 4 }
  0x3e   : > { %s1386_s27 = sshll.u32 %s1953_s23, 3  ;;  %s1937_s2 = sld [smem:[#allocation11_spill]] }
  0x3f   : > { %s1938_s3 = sld [smem:[#allocation12_spill]]  ;;  %s1344_s14 = sshll.u32 %s1953_s23, 2 }
  0x40   : > { %s1764_s25 = scalar_lea.vmem %s1911_s4, %s1344_s14  ;;  %s1774_s11 = scalar_lea.vmem %s1913_s6, %s1953_s23 }
  0x41   : > { %s501_s26 = scalar_lea.vmem %s1935_s0, %s1385_s21  ;;  %s1784_s14 = scalar_lea.vmem %s1917_s10, %s1385_s21 }
  0x42   : > { %s1749_s22 = scalar_lea.vmem %s1936_s1, %s1386_s27  ;;  %s1769_s27 = scalar_lea.vmem %s1912_s5, %s1953_s23 }
  0x43   : > { %s1387_s1 = sshll.u32 %s1953_s23, 4  ;;  %p1352_p7 = scmp.ne.s32.totalorder %s1589_s13, 0 }
  0x44   : > { %s1754_s12 = scalar_lea.vmem %s1937_s2, %s1953_s23  ;;  %s1779_s2 = scalar_lea.vmem %s1914_s7, %s1387_s1  ;;  %v552_v0 = vld [vmem:[%s501_s26] sm:$0xff] (!%p1352_p7)  ;;  %vm554_vm0 = vcmask (!%p1352_p7), 130048   ;;  %v553_v1 = vld [vmem:[%s501_s26 + $0x8] sm:$0xff] (!%p1352_p7) }
  0x45   : > { %s1759_s9 = scalar_lea.vmem %s1938_s3, %s1953_s23  ;;  %551 = sbr.rel (%p1352_p7) target bundleno = 76 (0x4c), region = 72  ;;  %555 = vst.msk [vmem:[%s1784_s14] sm:$0xff] (!%p1352_p7), %vm554_vm0, %v552_v0  ;;  %556 = vst.msk [vmem:[%s1784_s14 + $0x8] sm:$0xff] (!%p1352_p7), %vm554_vm0, %v553_v1 }
  0x4c PF: > { %v1515_v2 = vld [vmem:[%s1749_s22] sm:$0xff]   ;;  %v1609_v3 = vmov 0.0   ;;  %v1795_v5 = vld [vmem:[%s1784_s14 + $0x8] sm:$0xff]  ;;  %vm568_vm1 = vcmask 130048   ;;  %vm1610_vm2 = vmmov 0   ;;  %s1809_s0 = sshll.u32 %s1589_s13, 7  ;;  %v696_v40 = vlaneseq }
  0x4d   : > { %1399 = vmatprep.subr.bf16.mxu0 %v1609_v3  ;;  %v1792_v4 = vld [vmem:[%s1784_s14] sm:$0xff]  ;;  %1405 = vmatprep.subr.bf16.mxu1 %v1609_v3  ;;  %s614_s1 = sld [smem:[#allocation2 + %s1809_s0]]  ;;  %vm624_vm5 = vcmask 261120   ;;  %s1611_s28 = smov 0.0   ;;  %vm689_vm6 = vcmask 1040384   ;;  %vm712_vm7 = vcmask 1046528  }
  0x4e   : > { %1400 = vmatpush3.bf16.msra.mxu0 %v1515_v2  ;;  %1401 = vmatprep.mubr.msk.bf16.mxu0 %vm1610_vm2, %v1609_v3  ;;  %v559_v6 = vpack.c.bf16 %v1795_v5, %v1792_v4  ;;  %v1817_v44 = vshrl.u32 %v696_v40, 7  ;;  %v1356_v45 = vld [vmem:[%s1754_s12] ss:$0 sm:$0xff]  ;;  %s727_s18 = sld [smem:[#allocation4 + %s1809_s0]]  ;;  %vm991_vm12 = vcmask 1041408   ;;  %vm1014_vm13 = vcmask 1045504  }
  0x4f   : > { %1409 = vmatprep.mubr.msk.bf16.mxu1 %vm1610_vm2, %v1609_v3  ;;  %1413 = vmatprep.subr.bf16.mxu0 %v1609_v3  ;;  %v1357_v49 = vld [vmem:[%s1759_s9] ss:$0 sm:$0xff] }
  0x50   : > { %v706_v48 = vsub.s32 1, %v1817_v44  ;;  %v686_v51 = vld [vmem:[%s1764_s25] sm:$0x7]  ;;  %v698_v52 = vsub.s32 0, %v1817_v44  ;;  %v721_v55 = vsub.s32 2, %v1817_v44 }
  0x51   : > { %1402 = vmatmul.mubr.msk.bf16.vlgmr.msra.gmra.mrb[0].mxu0 %vm568_vm1, %v559_v6 }
  0x52   : > { %1415 = vmatprep.mubr.msk.bf16.mxu0 %vm1610_vm2, %v1609_v3  ;;  %v707_v58 = vrot.slane %v686_v51, %v706_v48  ;;  %v699_v59 = vrot.slane %v686_v51, %v698_v52  ;;  %v722_v0 = vrot.slane %v686_v51, %v721_v55 }
  0x53   : > { %v617_v7 = vstv %s614_s1 }
 0x124   : > { %v606_v8 = vpop.f32.mrb[0].mxu0 }
 0x125   : > { %vm615_vm3 = vcmp.ge.f32.partialorder %v606_v8, 0.0  ;;  %v618_v9 = vmul.f32 %v617_v7, %v606_v8  ;;  %v1403_v10 = vpop.f32.mrb[1].mxu0 }
 0x126   : > { %v609_v11 = vpop.f32.mrb[2].mxu0 }
 0x127   : > { %vm616_vm4 = vcmp.ge.f32.partialorder %v609_v11, 0.0  ;;  %v619_v12 = vmul.f32 %v617_v7, %v609_v11  ;;  %v1404_v13 = vpop.f32.mrb[3].mxu0  ;;  %v620_v14 = vsel %vm615_vm3, %v606_v8, %v618_v9 }
 0x128   : > { %v625_v16 = vsel %vm624_vm5, %v620_v14, 0.0  ;;  %v640_v18 = vmul.f32 %v620_v14, %v620_v14 }
 0x129   : > { %v621_v15 = vsel %vm616_vm4, %v609_v11, %v619_v12 }
 0x12a   : > { %v626_v17 = vsel %vm624_vm5, %v621_v15, 0.0  ;;  %v641_v19 = vmul.f32 %v621_v15, %v621_v15  ;;  %v642_v22 = vsel %vm624_vm5, %v640_v18, 0.0 }
 0x12b   : > { %v627_v20 = vadd.f32 %v626_v17, %v625_v16  ;;  %v730_v16 = vstv %s727_s18 }
 0x12c   : > { %v643_v21 = vsel %vm624_vm5, %v641_v19, 0.0 }
 0x12d   : > { %628 = vadd.xlane.f32.xlu0 %v627_v20  ;;  %v644_v23 = vadd.f32 %v643_v21, %v642_v22 }
 0x131   : > { %645 = vadd.xlane.f32.xlu0 %v644_v23 }
 0x1ba   : > { %v629_v24 = vpop.xlane.xlu0 %628 }
 0x1bb   : > { %v630_v25 = vrot.slane %v629_v24, 4 }
 0x1bd   : > { %v631_v26 = vadd.f32 %v630_v25, %v629_v24 }
 0x1be   : > { %v646_v27 = vpop.xlane.xlu0 %645 }
 0x1bf   : > { %v632_v28 = vrot.slane %v631_v26, 2  ;;  %v647_v29 = vrot.slane %v646_v27, 4 }
 0x1c1   : > { %v648_v30 = vadd.f32 %v647_v29, %v646_v27  ;;  %v633_v31 = vadd.f32 %v632_v28, %v631_v26 }
 0x1c3   : > { %v649_v32 = vrot.slane %v648_v30, 2  ;;  %v634_v33 = vrot.slane %v633_v31, 1 }
 0x1c5   : > { %v635_v34 = vadd.f32 %v634_v33, %v633_v31  ;;  %v650_v35 = vadd.f32 %v649_v32, %v648_v30 }
 0x1c7   : > { %1427 = vpush %v635_v34  ;;  %v651_v36 = vrot.slane %v650_v35, 1 }
 0x1c9   : > { %v652_v37 = vadd.f32 %v651_v36, %v650_v35 }
 0x1cb   : > { %1429 = vpush %v652_v37 }
 0x1f8   : > { %s1428_s3 = spop %1427 }
 0x1f9   : > { %s639_s13 = smul.f32 0.001953125, %s1428_s3 }
 0x1fb   : > { %s657_s23 = smul.f32 %s639_s13, %s639_s13  ;;  %v660_v41 = vstv %s639_s13 }
 0x1fc   : > { %s1430_s21 = spop %1429  ;;  %v661_v42 = vsub.f32 %v620_v14, %v660_v41  ;;  %v662_v43 = vsub.f32 %v621_v15, %v660_v41 }
 0x1fd   : > { %s656_s26 = smul.f32 0.001953125, %s1430_s21 }
 0x1fe   : > { %v669_v46 = vmul.f32 %v1356_v45, %v661_v42  ;;  %v670_v47 = vmul.f32 %v1356_v45, %v662_v43  ;;  %v1517_v45 = vld [vmem:[%s1779_s2 + $0x8] sm:$0xff]  }
 0x1ff   : > { %s658_s24 = ssub.f32 %s656_s26, %s657_s23 }
 0x201   : > { %s659_s29 = smax.f32 %s1611_s28, %s658_s24 }
 0x202   : > { %s671_s30 = sadd.f32 1e-08, %s659_s29  ;;  %s913_s29 = sadd.s32 1, %s1809_s0 }
 0x204   : > { %v672_v38 = vstv %s671_s30  ;;  %s914_s30 = sld [smem:[#allocation2 + %s913_s29]] }
 0x205   : > { %1521 = vrsqrt.f32 %v672_v38 }
 0x20f   : > { %v1522_v39 = vpop.eup %1521 }
 0x210   : > { %1431 = vpush %v1522_v39  ;;  %v1516_v39 = vld [vmem:[%s1779_s2] sm:$0xff]  }
 0x211   : > { %1406 = vmatpush3.bf16.msra.mxu1 %v1516_v39 }
 0x212   : > { %1407 = vmatprep.subr.bf16.mxu1 %v1609_v3 }
 0x215   : > { %1408 = vmatpush3.bf16.msra.mxu1 %v1517_v45 }
 0x216   : > { %1419 = vmatprep.subr.bf16.mxu1 %v1609_v3 }
 0x241   : > { %s1432_s8 = spop %1431 }
 0x242   : > { %v675_v50 = vstv %s1432_s8 }
 0x243   : > { %v676_v53 = vmul.f32 %v675_v50, %v669_v46  ;;  %v677_v54 = vmul.f32 %v675_v50, %v670_v47 }
 0x245   : > { %v684_v56 = vadd.f32 %v1357_v49, %v676_v53  ;;  %v685_v57 = vadd.f32 %v1357_v49, %v677_v54  ;;  %v1518_v49 = vld [vmem:[%s1749_s22 + $0x8] sm:$0xff]  }
 0x246   : > { %1414 = vmatpush3.bf16.msra.mxu0 %v1518_v49  ;;  %v1369_v49 = vld [vmem:[%s1754_s12 + $0x1] ss:$0 sm:$0xff] }
 0x247   : > { %v690_v60 = vrot.slane %v684_v56, 7  ;;  %v691_v61 = vrot.slane %v685_v57, 7  ;;  %v713_v62 = vrot.slane %v684_v56, 1  ;;  %v714_v63 = vrot.slane %v685_v57, 1 }
 0x248   : > { %v708_v6 = vmul.f32 %v707_v58, %v684_v56  ;;  %v709_v7 = vmul.f32 %v707_v58, %v685_v57  ;;  %v1358_v57 = vld [vmem:[%s1769_s27] ss:$0 sm:$0xff] }
 0x249   : > { %v692_v1 = vsel %vm689_vm6, %v690_v60, %v691_v61  ;;  %v695_v2 = vsel %vm689_vm6, 0.0, %v690_v60  ;;  %v718_v9 = vsel %vm712_vm7, %v714_v63, 0.0  ;;  %v715_v11 = vsel %vm712_vm7, %v713_v62, %v714_v63  ;;  %v1359_v60 = vld [vmem:[%s1774_s11] ss:$0 sm:$0xff] }
 0x24a   : > { %v700_v8 = vmul.f32 %v699_v59, %v695_v2  ;;  %v701_v10 = vmul.f32 %v699_v59, %v692_v1  ;;  %v723_v14 = vmul.f32 %v722_v0, %v715_v11  ;;  %v724_v15 = vmul.f32 %v722_v0, %v718_v9 }
 0x24c   : > { %v710_v12 = vadd.f32 %v708_v6, %v700_v8  ;;  %v711_v13 = vadd.f32 %v709_v7, %v701_v10 }
 0x24e   : > { %v725_v17 = vadd.f32 %v723_v14, %v710_v12  ;;  %v726_v18 = vadd.f32 %v724_v15, %v711_v13  ;;  %v917_v13 = vstv %s914_s30 }
 0x250   : > { %vm728_vm8 = vcmp.ge.f32.partialorder %v725_v17, 0.0  ;;  %vm729_vm9 = vcmp.ge.f32.partialorder %v726_v18, 0.0  ;;  %v731_v19 = vmul.f32 %v730_v16, %v725_v17  ;;  %v732_v20 = vmul.f32 %v730_v16, %v726_v18 }
 0x252   : > { %v733_v21 = vsel %vm728_vm8, %v725_v17, %v731_v19  ;;  %v734_v22 = vsel %vm729_vm9, %v726_v18, %v732_v20 }
 0x253   : > { %v737_v23 = vsel %vm624_vm5, %v733_v21, 0.0  ;;  %v738_v24 = vsel %vm624_vm5, %v734_v22, 0.0  ;;  %v752_v25 = vmul.f32 %v733_v21, %v733_v21  ;;  %v753_v26 = vmul.f32 %v734_v22, %v734_v22 }
 0x254   : > { %v739_v27 = vadd.f32 %v738_v24, %v737_v23 }
 0x255   : > { %v754_v28 = vsel %vm624_vm5, %v752_v25, 0.0  ;;  %v755_v29 = vsel %vm624_vm5, %v753_v26, 0.0 }
 0x256   : > { %740 = vadd.xlane.f32.xlu1 %v739_v27  ;;  %v756_v30 = vadd.f32 %v755_v29, %v754_v28 }
 0x25a   : > { %757 = vadd.xlane.f32.xlu1 %v756_v30 }
 0x2e3   : > { %v741_v31 = vpop.xlane.xlu1 %740 }
 0x2e4   : > { %v742_v32 = vrot.slane %v741_v31, 4 }
 0x2e6   : > { %v743_v33 = vadd.f32 %v742_v32, %v741_v31 }
 0x2e7   : > { %v758_v34 = vpop.xlane.xlu1 %757 }
 0x2e8   : > { %v744_v35 = vrot.slane %v743_v33, 2  ;;  %v759_v36 = vrot.slane %v758_v34, 4 }
 0x2ea   : > { %v760_v37 = vadd.f32 %v759_v36, %v758_v34  ;;  %v745_v38 = vadd.f32 %v744_v35, %v743_v33 }
 0x2ec   : > { %v761_v40 = vrot.slane %v760_v37, 2  ;;  %v746_v41 = vrot.slane %v745_v38, 1 }
 0x2ee   : > { %v747_v42 = vadd.f32 %v746_v41, %v745_v38  ;;  %v762_v43 = vadd.f32 %v761_v40, %v760_v37 }
 0x2f0   : > { %1433 = vpush %v747_v42  ;;  %v763_v46 = vrot.slane %v762_v43, 1 }
 0x2f2   : > { %v764_v47 = vadd.f32 %v763_v46, %v762_v43 }
 0x2f4   : > { %1435 = vpush %v764_v47 }
 0x321   : > { %s1434_s20 = spop %1433 }
 0x322   : > { %s751_s1 = smul.f32 0.001953125, %s1434_s20 }
 0x324   : > { %s769_s3 = smul.f32 %s751_s1, %s751_s1  ;;  %v772_v53 = vstv %s751_s1 }
 0x325   : > { %s1436_s13 = spop %1435  ;;  %v773_v54 = vsub.f32 %v733_v21, %v772_v53  ;;  %v774_v56 = vsub.f32 %v734_v22, %v772_v53  ;;  %v1370_v53 = vld [vmem:[%s1759_s9 + $0x1] ss:$0 sm:$0xff] }
 0x326   : > { %s768_s23 = smul.f32 0.001953125, %s1436_s13 }
 0x327   : > { %v781_v58 = vmul.f32 %v1358_v57, %v773_v54  ;;  %v782_v59 = vmul.f32 %v1358_v57, %v774_v56  ;;  %v1371_v56 = vld [vmem:[%s1764_s25 + $0x4] sm:$0x7] }
 0x328   : > { %s770_s21 = ssub.f32 %s768_s23, %s769_s3 }
 0x32a   : > { %s771_s26 = smax.f32 %s1611_s28, %s770_s21 }
 0x32b   : > { %s783_s24 = sadd.f32 1e-08, %s771_s26 }
 0x32d   : > { %v784_v50 = vstv %s783_s24  ;;  %s1029_s24 = sld [smem:[#allocation4 + %s913_s29]] }
 0x32e   : > { %1523 = vrsqrt.f32 %v784_v50 }
 0x338   : > { %v1524_v51 = vpop.eup %1523 }
 0x339   : > { %1437 = vpush %v1524_v51 }
 0x36a   : > { %s1438_s22 = spop %1437 }
 0x36b   : > { %v787_v61 = vstv %s1438_s22 }
 0x36c   : > { %v788_v62 = vmul.f32 %v787_v61, %v781_v58  ;;  %v789_v63 = vmul.f32 %v787_v61, %v782_v59  ;;  %v1009_v61 = vrot.slane %v1371_v56, %v706_v48 }
 0x36e   : > { %v796_v0 = vadd.f32 %v1359_v60, %v788_v62  ;;  %v797_v1 = vadd.f32 %v1359_v60, %v789_v63  ;;  %v1001_v62 = vrot.slane %v1371_v56, %v698_v52 }
 0x370   : > { %v798_v2 = vpack.c.bf16 %v797_v1, %v796_v0 }
 0x372   : > { %1410 = vmatmul.mubr.msk.bf16.vlgmr.msra.gmra.mrb[0].mxu1 %vm624_vm5, %v798_v2 }
 0x373   : > { %1423 = vmatprep.mubr.msk.bf16.mxu1 %vm1610_vm2, %v1609_v3 }
 0x445   : > { %v852_v6 = vpop.f32.mrb[0].mxu1 }
 0x446   : > { %v1411_v7 = vpop.f32.mrb[1].mxu1  ;;  %v1848_v9 = vadd.f32 %v852_v6, %v1792_v4  ;;  %v1024_v6 = vrot.slane %v1371_v56, %v721_v55 }
 0x447   : > { %v855_v8 = vpop.f32.mrb[2].mxu1 }
 0x448   : > { %v1851_v10 = vadd.f32 %v855_v8, %v1795_v5  ;;  %v1412_v11 = vpop.f32.mrb[3].mxu1 }
 0x44a   : > { %v859_v12 = vpack.c.bf16 %v1851_v10, %v1848_v9 }
 0x44c   : > { %1416 = vmatmul.mubr.msk.bf16.vlgmr.msra.gmra.mrb[4].mxu0 %vm568_vm1, %v859_v12 }
 0x51f   : > { %v906_v14 = vpop.f32.mrb[4].mxu0 }
 0x520   : > { %vm915_vm10 = vcmp.ge.f32.partialorder %v906_v14, 0.0  ;;  %v918_v15 = vmul.f32 %v917_v13, %v906_v14  ;;  %v1417_v16 = vpop.f32.mrb[5].mxu0 }
 0x521   : > { %v909_v17 = vpop.f32.mrb[6].mxu0 }
 0x522   : > { %v920_v4 = vsel %vm915_vm10, %v906_v14, %v918_v15  ;;  %vm916_vm11 = vcmp.ge.f32.partialorder %v909_v17, 0.0  ;;  %v919_v18 = vmul.f32 %v917_v13, %v909_v17  ;;  %v1418_v5 = vpop.f32.mrb[7].mxu0 }
 0x523   : > { %v941_v19 = vmul.f32 %v920_v4, %v920_v4  ;;  %v926_v21 = vsel %vm624_vm5, %v920_v4, 0.0 }
 0x524   : > { %v921_v20 = vsel %vm916_vm11, %v909_v17, %v919_v18  ;;  %v1032_v18 = vstv %s1029_s24 }
 0x525   : > { %v927_v22 = vsel %vm624_vm5, %v921_v20, 0.0  ;;  %v942_v23 = vmul.f32 %v921_v20, %v921_v20  ;;  %v943_v25 = vsel %vm624_vm5, %v941_v19, 0.0 }
 0x526   : > { %v928_v24 = vadd.f32 %v927_v22, %v926_v21 }
 0x527   : > { %v944_v26 = vsel %vm624_vm5, %v942_v23, 0.0 }
 0x528   : > { %929 = vadd.xlane.f32.xlu0 %v928_v24  ;;  %v945_v27 = vadd.f32 %v944_v26, %v943_v25 }
 0x52a   : > { %946 = vadd.xlane.f32.xlu1 %v945_v27 }
 0x5b5   : > { %v930_v28 = vpop.xlane.xlu0 %929 }
 0x5b6   : > { %v931_v29 = vrot.slane %v930_v28, 4 }
 0x5b7   : > { %v947_v30 = vpop.xlane.xlu1 %946 }
 0x5b8   : > { %v932_v31 = vadd.f32 %v931_v29, %v930_v28  ;;  %v948_v32 = vrot.slane %v947_v30, 4 }
 0x5ba   : > { %v933_v33 = vrot.slane %v932_v31, 2  ;;  %v949_v34 = vadd.f32 %v948_v32, %v947_v30 }
 0x5bc   : > { %v950_v35 = vrot.slane %v949_v34, 2  ;;  %v934_v36 = vadd.f32 %v933_v33, %v932_v31 }
 0x5be   : > { %v935_v37 = vrot.slane %v934_v36, 1  ;;  %v951_v38 = vadd.f32 %v950_v35, %v949_v34 }
 0x5c0   : > { %v936_v39 = vadd.f32 %v935_v37, %v934_v36  ;;  %v952_v40 = vrot.slane %v951_v38, 1  ;;  %v1519_v37 = vld [vmem:[%s1779_s2 + $0x10] sm:$0xff]  }
 0x5c1   : > { %1420 = vmatpush3.bf16.msra.mxu1 %v1519_v37 }
 0x5c2   : > { %1439 = vpush %v936_v39  ;;  %v953_v41 = vadd.f32 %v952_v40, %v951_v38  ;;  %1421 = vmatprep.subr.bf16.mxu1 %v1609_v3 }
 0x5c4   : > { %1441 = vpush %v953_v41 }
 0x5f3   : > { %s1440_s8 = spop %1439 }
 0x5f4   : > { %s940_s18 = smul.f32 0.001953125, %s1440_s8 }
 0x5f5   : > { %s1442_s20 = spop %1441 }
 0x5f6   : > { %s958_s1 = smul.f32 %s940_s18, %s940_s18  ;;  %v961_v45 = vstv %s940_s18 }
 0x5f7   : > { %s957_s3 = smul.f32 0.001953125, %s1442_s20  ;;  %v962_v46 = vsub.f32 %v920_v4, %v961_v45  ;;  %v963_v47 = vsub.f32 %v921_v20, %v961_v45 }
 0x5f9   : > { %s959_s13 = ssub.f32 %s957_s3, %s958_s1  ;;  %v970_v50 = vmul.f32 %v1369_v49, %v962_v46  ;;  %v971_v51 = vmul.f32 %v1369_v49, %v963_v47 }
 0x5fb   : > { %s960_s23 = smax.f32 %s1611_s28, %s959_s13 }
 0x5fc   : > { %s972_s21 = sadd.f32 1e-08, %s960_s23 }
 0x5fe   : > { %v973_v42 = vstv %s972_s21 }
 0x5ff   : > { %1525 = vrsqrt.f32 %v973_v42  ;;  %v1520_v42 = vld [vmem:[%s1779_s2 + $0x18] sm:$0xff]  }
 0x600   : > { %1422 = vmatpush3.bf16.msra.mxu1 %v1520_v42 }
 0x609   : > { %v1526_v43 = vpop.eup %1525 }
 0x60a   : > { %1443 = vpush %v1526_v43 }
 0x63b   : > { %s1444_s26 = spop %1443 }
 0x63c   : > { %v976_v54 = vstv %s1444_s26 }
 0x63d   : > { %v977_v57 = vmul.f32 %v976_v54, %v970_v50  ;;  %v978_v58 = vmul.f32 %v976_v54, %v971_v51 }
 0x63f   : > { %v985_v59 = vadd.f32 %v1370_v53, %v977_v57  ;;  %v986_v60 = vadd.f32 %v1370_v53, %v978_v58  ;;  %v1374_v53 = vld [vmem:[%s1769_s27 + $0x1] ss:$0 sm:$0xff] }
 0x640   : > { %v1375_v57 = vld [vmem:[%s1774_s11 + $0x1] ss:$0 sm:$0xff] }
 0x641   : > { %v992_v63 = vrot.slane %v985_v59, 6  ;;  %v993_v0 = vrot.slane %v986_v60, 6  ;;  %v1015_v1 = vrot.slane %v985_v59, 2  ;;  %v1016_v2 = vrot.slane %v986_v60, 2 }
 0x642   : > { %v1010_v11 = vmul.f32 %v1009_v61, %v985_v59  ;;  %v1011_v12 = vmul.f32 %v1009_v61, %v986_v60 }
 0x643   : > { %v994_v7 = vsel %vm991_vm12, %v992_v63, %v993_v0  ;;  %v997_v8 = vsel %vm991_vm12, 0.0, %v992_v63  ;;  %v1020_v15 = vsel %vm1014_vm13, %v1016_v2, 0.0  ;;  %v1017_v48 = vsel %vm1014_vm13, %v1015_v1, %v1016_v2 }
 0x644   : > { %v1002_v13 = vmul.f32 %v1001_v62, %v997_v8  ;;  %v1003_v14 = vmul.f32 %v1001_v62, %v994_v7  ;;  %v1026_v4 = vmul.f32 %v1024_v6, %v1020_v15  ;;  %v1025_v52 = vmul.f32 %v1024_v6, %v1017_v48 }
 0x646   : > { %v1012_v16 = vadd.f32 %v1010_v11, %v1002_v13  ;;  %v1013_v17 = vadd.f32 %v1011_v12, %v1003_v14 }
 0x648   : > { %v1027_v5 = vadd.f32 %v1025_v52, %v1012_v16  ;;  %v1028_v19 = vadd.f32 %v1026_v4, %v1013_v17 }
 0x64a   : > { %vm1030_vm14 = vcmp.ge.f32.partialorder %v1027_v5, 0.0  ;;  %vm1031_vm15 = vcmp.ge.f32.partialorder %v1028_v19, 0.0  ;;  %v1033_v20 = vmul.f32 %v1032_v18, %v1027_v5  ;;  %v1034_v44 = vmul.f32 %v1032_v18, %v1028_v19 }
 0x64c   : > { %v1035_v55 = vsel %vm1030_vm14, %v1027_v5, %v1033_v20  ;;  %v1036_v21 = vsel %vm1031_vm15, %v1028_v19, %v1034_v44 }
 0x64d   : > { %v1041_v22 = vsel %vm624_vm5, %v1035_v55, 0.0  ;;  %v1042_v23 = vsel %vm624_vm5, %v1036_v21, 0.0  ;;  %v1056_v24 = vmul.f32 %v1035_v55, %v1035_v55  ;;  %v1057_v25 = vmul.f32 %v1036_v21, %v1036_v21 }
 0x64e   : > { %v1043_v26 = vadd.f32 %v1042_v23, %v1041_v22 }
 0x64f   : > { %v1058_v27 = vsel %vm624_vm5, %v1056_v24, 0.0  ;;  %v1059_v28 = vsel %vm624_vm5, %v1057_v25, 0.0 }
 0x650   : > { %1044 = vadd.xlane.f32.xlu0 %v1043_v26  ;;  %v1060_v29 = vadd.f32 %v1059_v28, %v1058_v27 }
 0x652   : > { %1061 = vadd.xlane.f32.xlu1 %v1060_v29 }
 0x6dd   : > { %v1045_v30 = vpop.xlane.xlu0 %1044 }
 0x6de   : > { %v1046_v31 = vrot.slane %v1045_v30, 4 }
 0x6df   : > { %v1062_v32 = vpop.xlane.xlu1 %1061 }
 0x6e0   : > { %v1047_v33 = vadd.f32 %v1046_v31, %v1045_v30  ;;  %v1063_v34 = vrot.slane %v1062_v32, 4 }
 0x6e2   : > { %v1048_v35 = vrot.slane %v1047_v33, 2  ;;  %v1064_v36 = vadd.f32 %v1063_v34, %v1062_v32 }
 0x6e4   : > { %v1049_v38 = vadd.f32 %v1048_v35, %v1047_v33  ;;  %v1065_v39 = vrot.slane %v1064_v36, 2 }
 0x6e6   : > { %v1066_v40 = vadd.f32 %v1065_v39, %v1064_v36  ;;  %v1050_v41 = vrot.slane %v1049_v38, 1 }
 0x6e8   : > { %v1051_v43 = vadd.f32 %v1050_v41, %v1049_v38  ;;  %v1067_v45 = vrot.slane %v1066_v40, 1 }
 0x6ea   : > { %1445 = vpush %v1051_v43  ;;  %v1068_v46 = vadd.f32 %v1067_v45, %v1066_v40 }
 0x6ec   : > { %1447 = vpush %v1068_v46 }
 0x71b   : > { %s1446_s9 = spop %1445 }
 0x71c   : > { %s1055_s12 = smul.f32 0.001953125, %s1446_s9 }
 0x71d   : > { %s1448_s25 = spop %1447 }
 0x71e   : > { %s1073_s0 = smul.f32 %s1055_s12, %s1055_s12  ;;  %v1076_v49 = vstv %s1055_s12 }
 0x71f   : > { %s1072_s22 = smul.f32 0.001953125, %s1448_s25  ;;  %v1077_v50 = vsub.f32 %v1035_v55, %v1076_v49  ;;  %v1078_v51 = vsub.f32 %v1036_v21, %v1076_v49 }
 0x721   : > { %s1074_s29 = ssub.f32 %s1072_s22, %s1073_s0  ;;  %v1085_v54 = vmul.f32 %v1374_v53, %v1077_v50  ;;  %v1086_v56 = vmul.f32 %v1374_v53, %v1078_v51 }
 0x723   : > { %s1075_s30 = smax.f32 %s1611_s28, %s1074_s29 }
 0x724   : > { %s1087_s8 = sadd.f32 1e-08, %s1075_s30 }
 0x726   : > { %v1088_v3 = vstv %s1087_s8 }
 0x727   : > { %1527 = vrsqrt.f32 %v1088_v3 }
 0x731   : > { %v1528_v47 = vpop.eup %1527 }
 0x732   : > { %1449 = vpush %v1528_v47 }
 0x763   : > { %s1450_s2 = spop %1449 }
 0x764   : > { %v1091_v58 = vstv %s1450_s2 }
 0x765   : > { %v1092_v59 = vmul.f32 %v1091_v58, %v1085_v54  ;;  %v1093_v60 = vmul.f32 %v1091_v58, %v1086_v56 }
 0x767   : > { %v1100_v61 = vadd.f32 %v1375_v57, %v1092_v59  ;;  %v1101_v62 = vadd.f32 %v1375_v57, %v1093_v60 }
 0x769   : > { %v1102_v63 = vpack.c.bf16 %v1101_v62, %v1100_v61 }
 0x76b   : > { %1424 = vmatmul.mubr.msk.bf16.vlgmr.msra.gmra.mrb[4].mxu1 %vm624_vm5, %v1102_v63 }
 0x83e   : > { %v1157_v0 = vpop.f32.mrb[4].mxu1 }
 0x83f   : > { %v1158_v1 = vadd.f32 %v1157_v0, %v1848_v9  ;;  %v1425_v2 = vpop.f32.mrb[5].mxu1 }
 0x840   : > { %v1160_v6 = vpop.f32.mrb[6].mxu1 }
 0x841   : > { %1164 = vst.msk [vmem:[%s1784_s14] sm:$0xff] %vm568_vm1, %v1158_v1  ;;  %v1161_v7 = vadd.f32 %v1160_v6, %v1851_v10  ;;  %v1426_v8 = vpop.f32.mrb[7].mxu1 }
 0x843   : > { %1165 = vst.msk [vmem:[%s1784_s14 + $0x8] sm:$0xff] %vm568_vm1, %v1161_v7 }
 0x844 PF: > { %s22_s17 = sadd.s32 1, %s1605_s17   ;;  %s1939_s27 = sld [smem:[#allocation8_spill]] }
 0x845   : > { %p19_p9 = scmp.ge.s32.totalorder %s22_s17, 6   ;;  %s1940_s13 = smov %s1597_s15 }
 0x846   : > { %s1941_s14 = smov %s1601_s16  ;;  %s1942_s15 = smov %s1945_s19 }
 0x847   :  { %21 = sbr.rel (!%p19_p9) target bundleno = 11 (0xb), region = 131 }
 0x84a   : > { %s1943_s16 = smov %s1939_s27 }
 0x84e   :  { %1187 = vsyncpa [#allocation3], 1 }
 0x84f   :  { %1189 = vsyncpa [#allocation3 + $0x1], 1 }
 0x850   :  { %1190 = vsyncpa [#allocation5], 1 }

</bundles_post_ra>
